<compile_context>
chip_gen: v7x
topology: tpu7x:2x2x1
jax: 0.10.0
libtpu: 0.0.40
codegen_flags: <defaults>
</compile_context>

<pallas_src>
import functools

import jax
import jax.numpy as jnp
from jax.experimental import pallas as pl
from jax.experimental.pallas import tpu as pltpu

_VMEM_LIMIT = 32 * 1024 * 1024


# ----------------------------------------------------------------------------
# small helpers
# ----------------------------------------------------------------------------
def _cdiv(a, b):
    return -(-a // b)


def _round_up(x, m):
    return (x + m - 1) // m * m


def _pick_tile(m, cap=1024):
    """Row tile (multiple of 128, <= cap) and the padded row count."""
    m128 = _round_up(m, 128)
    if m128 <= cap:
        return m128, m128
    steps = _cdiv(m128, cap)
    tm = _round_up(_cdiv(m128, steps), 128)
    return tm, tm * steps


# ----------------------------------------------------------------------------
# Pallas kernel: one K-concatenated GEMM tile + bias + activation (+ BN stats)
# ----------------------------------------------------------------------------
def _fused_gemm_kernel(x_ref, w_ref, b_ref, o_ref, *stat_refs,
                       act, collect_stats, m_valid, tm):
    x = x_ref[0]                                              # (tm, K)
    acc = jnp.dot(x, w_ref[0], preferred_element_type=jnp.float32)
    acc = acc + b_ref[...]                                    # (1, C) broadcast

    if act == "relu":
        out = jnp.maximum(acc, 0.0)
    elif act == "tanh":
        out = jnp.tanh(acc)
    else:
        out = acc
    o_ref[0] = out.astype(o_ref.dtype)

    if collect_stats:
        sum_ref, sq_ref = stat_refs
        rows = (pl.program_id(1) * tm
                + jax.lax.broadcasted_iota(jnp.int32, acc.shape, 0))
        masked = jnp.where(rows < m_valid, acc, 0.0)          # drop pad rows
        sum_ref[0, 0] = jnp.sum(masked, axis=0, keepdims=True)
        sq_ref[0, 0] = jnp.sum(masked * masked, axis=0, keepdims=True)


def fused_gemm(x, w, bias, act, collect_stats=False,
               out_dtype=jnp.bfloat16, tile_cap=1024):
    """x: (P, M, K) bf16; w: (P, K, C) bf16; bias: (C,) f32.
    Returns act(x[p] @ w[p] + bias) as (P, M, C); with collect_stats also the
    per-column sum / sum-of-squares of the pre-activation over all P*M valid
    rows (BatchNorm batch statistics), reduced from per-tile partials."""
    P, M, K = x.shape
    C = w.shape[-1]
    tm, Mp = _pick_tile(M, tile_cap)
    nt = Mp // tm
    if Mp != M:
        x = jnp.pad(x, ((0, 0), (0, Mp - M), (0, 0)))

    kernel = functools.partial(_fused_gemm_kernel, act=act,
                               collect_stats=collect_stats, m_valid=M, tm=tm)

    in_specs = [pl.BlockSpec((1, tm, K), lambda p, t: (p, t, 0)),
                pl.BlockSpec((1, K, C), lambda p, t: (p, 0, 0)),
                pl.BlockSpec((1, C), lambda p, t: (0, 0))]

    if collect_stats:
        out_shape = (jax.ShapeDtypeStruct((P, Mp, C), out_dtype),
                     jax.ShapeDtypeStruct((P, nt, 1, C), jnp.float32),
                     jax.ShapeDtypeStruct((P, nt, 1, C), jnp.float32))
        out_specs = (pl.BlockSpec((1, tm, C), lambda p, t: (p, t, 0)),
                     pl.BlockSpec((1, 1, 1, C), lambda p, t: (p, t, 0, 0)),
                     pl.BlockSpec((1, 1, 1, C), lambda p, t: (p, t, 0, 0)))
    else:
        out_shape = jax.ShapeDtypeStruct((P, Mp, C), out_dtype)
        out_specs = pl.BlockSpec((1, tm, C), lambda p, t: (p, t, 0))

    res = pl.pallas_call(
        kernel,
        out_shape=out_shape,
        grid=(P, nt),
        in_specs=in_specs,
        out_specs=out_specs,
        compiler_params=pltpu.CompilerParams(
            dimension_semantics=("parallel", "parallel"),
            vmem_limit_bytes=_VMEM_LIMIT),
    )(x, w, bias.reshape(1, C).astype(jnp.float32))

    if collect_stats:
        y, s, sq = res
        return (y[:, :M],
                jnp.sum(s, axis=(0, 1, 2)),
                jnp.sum(sq, axis=(0, 1, 2)))
    return res[:, :M]


# ----------------------------------------------------------------------------
# layer glue (XLA data-movement only; elementwise BN fused into these copies)
# ----------------------------------------------------------------------------
def _space_to_depth2(x):
    """(N, H, W, C), H/W even -> (N, H//2, W//2, 4C); channel order (rh, rw, c)."""
    N, H, W, C = x.shape
    x = x.reshape(N, H // 2, 2, W // 2, 2, C)
    x = jnp.transpose(x, (0, 1, 3, 2, 4, 5))
    return x.reshape(N, H // 2, W // 2, 4 * C)


def conv4x4_s2(x, w, bias, act, collect_stats=False):
    """Conv2d(Cin, Cout, 4, 2, 1) NHWC via space-to-depth + one K-concat GEMM."""
    xp = jnp.pad(x, ((0, 0), (1, 1), (1, 1), (0, 0)))
    z = _space_to_depth2(xp)                        # (N, H/2+1, W/2+1, 4Cin)
    N, Hz, Wz, C4 = z.shape
    Ho, Wo = Hz - 1, Wz - 1
    X = jnp.concatenate([z[:, a:a + Ho, b:b + Wo, :]
                         for a in (0, 1) for b in (0, 1)], axis=-1)
    X = X.reshape(1, N * Ho * Wo, 4 * C4)
    res = fused_gemm(X, w[None], bias, act, collect_stats)
    if collect_stats:
        y, s, sq = res
        return y[0].reshape(N, Ho, Wo, -1), s, sq
    return res[0].reshape(N, Ho, Wo, -1)


def convT4x4_s2(x, w_rh, bias, act, collect_stats=False):
    """ConvTranspose2d(Cin, Cout, 4, 2, 1) NHWC: the two rw (W-parity) phases
    are fused along the output-channel axis (K = 6*Cin, width 2*Cout) and the
    two rh (H-parity) phases form a size-2 grid axis of one pallas_call."""
    N, H, W, Cin = x.shape
    Cout = w_rh.shape[-1] // 2
    xw = jnp.pad(x, ((0, 0), (0, 0), (1, 1), (0, 0)))
    slabs = []
    for rh in (0, 1):
        xr = jnp.pad(xw, ((0, 0), (1, 0) if rh == 0 else (0, 1),
                          (0, 0), (0, 0)))
        taps = jnp.concatenate([xr[:, a:a + H, c:c + W, :]
                                for a in (0, 1) for c in (0, 1, 2)], axis=-1)
        slabs.append(taps.reshape(N * H * W, 6 * Cin))
    X = jnp.stack(slabs, axis=0)                    # (2, M, 6*Cin)
    res = fused_gemm(X, w_rh, jnp.concatenate([bias, bias]), act,
                     collect_stats)
    if collect_stats:
        y, s, sq = res
        s = s.reshape(2, Cout).sum(0)               # fold the two rw halves
        sq = sq.reshape(2, Cout).sum(0)
    else:
        y = res
    # (rh, n*i*j, (rw, c)) -> (N, 2H, 2W, C): the rw interleave is a free
    # reshape, the rh interleave one coarse block-strided copy.
    y = y.reshape(2, N, H, W, 2, Cout)
    y = jnp.transpose(y, (1, 2, 0, 3, 4, 5)).reshape(N, 2 * H, 2 * W, Cout)
    if collect_stats:
        return y, s, sq
    return y


def batchnorm_relu(h, s, sq, gamma, beta, eps=1e-5):
    """Training-mode BatchNorm2d + ReLU from the in-GEMM per-channel sums.
    Plain jnp elementwise so XLA fuses it into the next layer's tap copies."""
    N, H, W, C = h.shape
    count = N * H * W
    mean = s / count
    var = jnp.maximum(sq / count - mean * mean, 0.0)   # guard f32 cancellation
    scale = gamma / jnp.sqrt(var + eps)
    shift = beta - mean * scale
    return jnp.maximum(h.astype(jnp.float32) * scale + shift,
                       0.0).astype(jnp.bfloat16)


# ----------------------------------------------------------------------------
# Generator forward (matches the PyTorch nn.Sequential)
# ----------------------------------------------------------------------------
def generator_forward(x_nchw, params):
    x = jnp.transpose(x_nchw, (0, 2, 3, 1)).astype(jnp.bfloat16)   # NHWC bf16

    # Conv2d(3, 64, 4, 2, 1) + ReLU (fused epilogue)
    h = conv4x4_s2(x, params["w1"], params["b1"], "relu")

    # Conv2d(64, 128, 4, 2, 1) + BatchNorm2d(128) + ReLU (stats fused in GEMM)
    h, s, sq = conv4x4_s2(h, params["w2"], params["b2"], "none",
                          collect_stats=True)
    h = batchnorm_relu(h, s, sq, params["g1"], params["be1"])

    # ConvTranspose2d(128, 64, 4, 2, 1) + BatchNorm2d(64) + ReLU
    h, s, sq = convT4x4_s2(h, params["w3"], params["b3"], "none",
                           collect_stats=True)
    h = batchnorm_relu(h, s, sq, params["g2"], params["be2"])

    # ConvTranspose2d(64, 3, 4, 2, 1) + Tanh (fused; 6-wide output, no pad-128)
    h = convT4x4_s2(h, params["w4"], params["b4"], "tanh")

    return jnp.transpose(h, (0, 3, 1, 2)).astype(jnp.float32)       # NCHW f32


# ----------------------------------------------------------------------------
# parameter init (PyTorch layouts) and conversion to fused-GEMM form
# ----------------------------------------------------------------------------
def _conv_tap_weights(w):
    """Conv2d weight (Cout, Cin, 4, 4) -> K-concatenated (16*Cin, Cout) matrix
    matching space-to-depth + 4-tap concat column order (qh, qw, rh, rw, c)."""
    Cout, Cin = w.shape[:2]
    wt = jnp.transpose(w, (2, 3, 1, 0))             # (kh, kw, Cin, Cout)
    wt = wt.reshape(2, 2, 2, 2, Cin, Cout)          # (qh, rh, qw, rw, c, co)
    wt = jnp.transpose(wt, (0, 2, 1, 3, 4, 5))      # (qh, qw, rh, rw, c, co)
    return wt.reshape(16 * Cin, Cout).astype(jnp.bfloat16)


def _convT_fused_weights(w):
    """ConvTranspose2d weight (Cin, Cout, 4, 4) -> (2, 6*Cin, 2*Cout):
    leading axis = rh phase, rows ordered (a, c, cin) over the shared 2x3 tap
    window, columns ordered (rw, cout); taps an rw phase doesn't use are 0."""
    Cin, Cout = w.shape[:2]
    zeros = jnp.zeros((Cin, Cout), w.dtype)
    phases = []
    for rh in (0, 1):
        rows = []
        for a in (0, 1):
            kh = (3 - rh) - 2 * a
            for c in (0, 1, 2):
                w_rw0 = w[:, :, kh, 3 - 2 * c] if c in (0, 1) else zeros
                w_rw1 = w[:, :, kh, 4 - 2 * c] if c in (1, 2) else zeros
                rows.append(jnp.concatenate([w_rw0, w_rw1], axis=1))
        phases.append(jnp.concatenate(rows, axis=0))        # (6*Cin, 2*Cout)
    return jnp.stack(phases, axis=0).astype(jnp.bfloat16)


def init_raw_params(key):
    """Synthetic parameters with the PyTorch module's shapes / layouts."""
    ks = jax.random.split(key, 8)
    return {
        # Conv2d weight layout (Cout, Cin, kh, kw)
        "w1": 0.05 * jax.random.normal(ks[0], (64, 3, 4, 4), jnp.float32),
        "b1": 0.01 * jax.random.normal(ks[1], (64,), jnp.float32),
        "w2": 0.05 * jax.random.normal(ks[2], (128, 64, 4, 4), jnp.float32),
        "b2": 0.01 * jax.random.normal(ks[3], (128,), jnp.float32),
        # ConvTranspose2d weight layout (Cin, Cout, kh, kw)
        "w3": 0.05 * jax.random.normal(ks[4], (128, 64, 4, 4), jnp.float32),
        "b3": 0.01 * jax.random.normal(ks[5], (64,), jnp.float32),
        "w4": 0.05 * jax.random.normal(ks[6], (64, 3, 4, 4), jnp.float32),
        "b4": 0.01 * jax.random.normal(ks[7], (3,), jnp.float32),
        # BatchNorm2d affine params (PyTorch default init)
        "g1": jnp.ones((128,), jnp.float32),
        "be1": jnp.zeros((128,), jnp.float32),
        "g2": jnp.ones((64,), jnp.float32),
        "be2": jnp.zeros((64,), jnp.float32),
    }


def prepare_params(raw):
    """Re-pack PyTorch-layout weights into the fused-GEMM form used on TPU."""
    return {
        "w1": _conv_tap_weights(raw["w1"]), "b1": raw["b1"],
        "w2": _conv_tap_weights(raw["w2"]), "b2": raw["b2"],
        "w3": _convT_fused_weights(raw["w3"]), "b3": raw["b3"],
        "w4": _convT_fused_weights(raw["w4"]), "b4": raw["b4"],
        "g1": raw["g1"], "be1": raw["be1"],
        "g2": raw["g2"], "be2": raw["be2"],
    }


# ----------------------------------------------------------------------------
# pure-XLA f32 reference of the same module (sanity check only)
# ----------------------------------------------------------------------------
def reference_forward(x, p, eps=1e-5):
    def conv(h, w, b):
        y = jax.lax.conv_general_dilated(
            h, w, (2, 2), ((1, 1), (1, 1)),
            dimension_numbers=("NCHW", "OIHW", "NCHW"))
        return y + b.reshape(1, -1, 1, 1)

    def convt(h, w, b):
        wf = jnp.transpose(w, (1, 0, 2, 3))[:, :, ::-1, ::-1]
        y = jax.lax.conv_general_dilated(
            h, wf, (1, 1), ((2, 2), (2, 2)), lhs_dilation=(2, 2),
            dimension_numbers=("NCHW", "OIHW", "NCHW"))
        return y + b.reshape(1, -1, 1, 1)

    def bn_relu(h, g, b):
        mean = jnp.mean(h, axis=(0, 2, 3), keepdims=True)
        var = jnp.mean(jnp.square(h - mean), axis=(0, 2, 3), keepdims=True)
        y = (h - mean) / jnp.sqrt(var + eps)
        return jnp.maximum(
            y * g.reshape(1, -1, 1, 1) + b.reshape(1, -1, 1, 1), 0.0)

    h = jnp.maximum(conv(x, p["w1"], p["b1"]), 0.0)
    h = bn_relu(conv(h, p["w2"], p["b2"]), p["g1"], p["be1"])
    h = bn_relu(convt(h, p["w3"], p["b3"]), p["g2"], p["be2"])
    return jnp.tanh(convt(h, p["w4"], p["b4"]))


if __name__ == "__main__":
    key = jax.random.PRNGKey(0)
    pkey, xkey = jax.random.split(key)
    raw = init_raw_params(pkey)
    params = prepare_params(raw)

    # Small NCHW input consistent with the module (3 input channels).
    x = jax.random.normal(xkey, (2, 3, 16, 16), jnp.float32)

    fwd = jax.jit(generator_forward)
    y = fwd(x, params)
    jax.block_until_ready(y)

    assert y.shape == (2, 3, 16, 16), y.shape
    assert bool(jnp.all(jnp.isfinite(y)))
    assert bool(jnp.all(jnp.abs(y) <= 1.0 + 1e-2))   # tanh output range

    # Loose sanity check vs a pure-XLA f32 reference (kernels use bf16 storage).
    y_ref = reference_forward(x, raw)
    err = float(jnp.max(jnp.abs(y - y_ref)))
    assert err < 0.2, f"max abs error vs reference: {err}"

    print("KERNEL_OK")
</pallas_src>

<mosaic_0001>
module attributes {stable_mosaic.version = 11 : i64} {
  func.func @_fused_gemm_kernel(%arg0: i32, %arg1: i32, %arg2: memref<1x128x48xbf16, #tpu.memory_space<vmem>>, %arg3: memref<1x48x64xbf16, #tpu.memory_space<vmem>>, %arg4: memref<1x64xf32, #tpu.memory_space<vmem>>, %arg5: memref<1x128x64xbf16, #tpu.memory_space<vmem>>) attributes {dimension_semantics = [#tpu.dimension_semantics<parallel>, #tpu.dimension_semantics<parallel>], iteration_bounds = array<i64: 1, 1>, scalar_prefetch = 0 : i64, scratch_operands = 0 : i64, tpu.core_type = #tpu.core_type<tc>, window_params = [{transform_indices = @transform_0, window_bounds = array<i64: 1, 128, 48>}, {transform_indices = @transform_1, window_bounds = array<i64: 1, 48, 64>}, {pipeline_mode = #tpu.pipeline_mode<synchronous>, transform_indices = @transform_2, window_bounds = array<i64: 1, 64>}, {transform_indices = @transform_3, window_bounds = array<i64: 1, 128, 64>}]} {
    %c0 = arith.constant 0 : index
    %c0_0 = arith.constant 0 : index
    %c0_1 = arith.constant 0 : index
    %0 = vector.load %arg2[%c0, %c0_0, %c0_1] : memref<1x128x48xbf16, #tpu.memory_space<vmem>>, vector<1x128x48xbf16>
    %1 = vector.shape_cast %0 : vector<1x128x48xbf16> to vector<128x48xbf16>
    %c0_2 = arith.constant 0 : index
    %c0_3 = arith.constant 0 : index
    %c0_4 = arith.constant 0 : index
    %2 = vector.load %arg3[%c0_2, %c0_3, %c0_4] : memref<1x48x64xbf16, #tpu.memory_space<vmem>>, vector<1x48x64xbf16>
    %3 = vector.shape_cast %2 : vector<1x48x64xbf16> to vector<48x64xbf16>
    %cst = arith.constant dense<0.000000e+00> : vector<128x64xf32>
    %4 = tpu.matmul %1, %3, %cst {dimension_numbers = #tpu.dot_dimension_numbers<[1], [0], [0], [1], [0, 0, 1, 1], [], []>} : vector<128x48xbf16>, vector<48x64xbf16>, vector<128x64xf32> -> vector<128x64xf32>
    %c0_5 = arith.constant 0 : index
    %c0_6 = arith.constant 0 : index
    %5 = vector.load %arg4[%c0_5, %c0_6] : memref<1x64xf32, #tpu.memory_space<vmem>>, vector<1x64xf32>
    %6 = vector.broadcast %5 : vector<1x64xf32> to vector<128x64xf32>
    %7 = arith.addf %4, %6 : vector<128x64xf32>
    %cst_7 = arith.constant 0.000000e+00 : f32
    %8 = vector.broadcast %cst_7 : f32 to vector<128x64xf32>
    %9 = arith.maximumf %7, %8 : vector<128x64xf32>
    %10 = arith.truncf %9 : vector<128x64xf32> to vector<128x64xbf16>
    %c0_8 = arith.constant 0 : index
    %c0_9 = arith.constant 0 : index
    %c0_10 = arith.constant 0 : index
    %11 = vector.load %arg5[%c0_8, %c0_9, %c0_10] : memref<1x128x64xbf16, #tpu.memory_space<vmem>>, vector<1x128x64xbf16>
    %12 = vector.shape_cast %11 : vector<1x128x64xbf16> to vector<128x64xbf16>
    %13 = vector.shape_cast %10 : vector<128x64xbf16> to vector<1x128x64xbf16>
    tpu.vector_store %arg5[%c0_8, %c0_9, %c0_10], %13 {strides = array<i32>} : memref<1x128x64xbf16, #tpu.memory_space<vmem>>, vector<1x128x64xbf16>,
    return
  }
  func.func @transform_0(%arg0: i32, %arg1: i32) -> (i32, i32, i32) {
    %c0_i32 = arith.constant 0 : i32
    %c0_i32_0 = arith.constant 0 : i32
    return %arg0, %arg1, %c0_i32 : i32, i32, i32
  }
  func.func @transform_1(%arg0: i32, %arg1: i32) -> (i32, i32, i32) {
    %c0_i32 = arith.constant 0 : i32
    %c0_i32_0 = arith.constant 0 : i32
    %c0_i32_1 = arith.constant 0 : i32
    return %arg0, %c0_i32, %c0_i32_0 : i32, i32, i32
  }
  func.func @transform_2(%arg0: i32, %arg1: i32) -> (i32, i32) {
    %c0_i32 = arith.constant 0 : i32
    %c0_i32_0 = arith.constant 0 : i32
    %c0_i32_1 = arith.constant 0 : i32
    return %c0_i32, %c0_i32_0 : i32, i32
  }
  func.func @transform_3(%arg0: i32, %arg1: i32) -> (i32, i32, i32) {
    %c0_i32 = arith.constant 0 : i32
    %c0_i32_0 = arith.constant 0 : i32
    return %arg0, %arg1, %c0_i32 : i32, i32, i32
  }
}

module attributes {stable_mosaic.version = 11 : i64} {
  func.func @_fused_gemm_kernel(%arg0: i32, %arg1: i32, %arg2: memref<1x128x1024xbf16, #tpu.memory_space<vmem>>, %arg3: memref<1x1024x128xbf16, #tpu.memory_space<vmem>>, %arg4: memref<1x128xf32, #tpu.memory_space<vmem>>, %arg5: memref<1x128x128xbf16, #tpu.memory_space<vmem>>, %arg6: memref<1x1x1x128xf32, #tpu.memory_space<vmem>>, %arg7: memref<1x1x1x128xf32, #tpu.memory_space<vmem>>) attributes {dimension_semantics = [#tpu.dimension_semantics<parallel>, #tpu.dimension_semantics<parallel>], iteration_bounds = array<i64: 1, 1>, scalar_prefetch = 0 : i64, scratch_operands = 0 : i64, tpu.core_type = #tpu.core_type<tc>, window_params = [{transform_indices = @transform_0, window_bounds = array<i64: 1, 128, 1024>}, {transform_indices = @transform_1, window_bounds = array<i64: 1, 1024, 128>}, {pipeline_mode = #tpu.pipeline_mode<synchronous>, transform_indices = @transform_2, window_bounds = array<i64: 1, 128>}, {transform_indices = @transform_3, window_bounds = array<i64: 1, 128, 128>}, {transform_indices = @transform_4, window_bounds = array<i64: 1, 1, 1, 128>}, {transform_indices = @transform_5, window_bounds = array<i64: 1, 1, 1, 128>}]} {
    %c0 = arith.constant 0 : index
    %c0_0 = arith.constant 0 : index
    %c0_1 = arith.constant 0 : index
    %0 = vector.load %arg2[%c0, %c0_0, %c0_1] : memref<1x128x1024xbf16, #tpu.memory_space<vmem>>, vector<1x128x1024xbf16>
    %1 = vector.shape_cast %0 : vector<1x128x1024xbf16> to vector<128x1024xbf16>
    %c0_2 = arith.constant 0 : index
    %c0_3 = arith.constant 0 : index
    %c0_4 = arith.constant 0 : index
    %2 = vector.load %arg3[%c0_2, %c0_3, %c0_4] : memref<1x1024x128xbf16, #tpu.memory_space<vmem>>, vector<1x1024x128xbf16>
    %3 = vector.shape_cast %2 : vector<1x1024x128xbf16> to vector<1024x128xbf16>
    %cst = arith.constant dense<0.000000e+00> : vector<128x128xf32>
    %4 = tpu.matmul %1, %3, %cst {dimension_numbers = #tpu.dot_dimension_numbers<[1], [0], [0], [1], [0, 0, 1, 1], [], []>} : vector<128x1024xbf16>, vector<1024x128xbf16>, vector<128x128xf32> -> vector<128x128xf32>
    %c0_5 = arith.constant 0 : index
    %c0_6 = arith.constant 0 : index
    %5 = vector.load %arg4[%c0_5, %c0_6] : memref<1x128xf32, #tpu.memory_space<vmem>>, vector<1x128xf32>
    %6 = vector.broadcast %5 : vector<1x128xf32> to vector<128x128xf32>
    %7 = arith.addf %4, %6 : vector<128x128xf32>
    %8 = arith.truncf %7 : vector<128x128xf32> to vector<128x128xbf16>
    %c0_7 = arith.constant 0 : index
    %c0_8 = arith.constant 0 : index
    %c0_9 = arith.constant 0 : index
    %9 = vector.load %arg5[%c0_7, %c0_8, %c0_9] : memref<1x128x128xbf16, #tpu.memory_space<vmem>>, vector<1x128x128xbf16>
    %10 = vector.shape_cast %9 : vector<1x128x128xbf16> to vector<128x128xbf16>
    %11 = vector.shape_cast %8 : vector<128x128xbf16> to vector<1x128x128xbf16>
    tpu.vector_store %arg5[%c0_7, %c0_8, %c0_9], %11 {strides = array<i32>} : memref<1x128x128xbf16, #tpu.memory_space<vmem>>, vector<1x128x128xbf16>,
    %c128_i32 = arith.constant 128 : i32
    %12 = arith.muli %arg1, %c128_i32 : i32
    %13 = tpu.iota {dimensions = array<i32: 0>} : vector<128x128xi32>
    %14 = vector.broadcast %12 : i32 to vector<128x128xi32>
    %15 = arith.addi %14, %13 : vector<128x128xi32>
    %c32_i32 = arith.constant 32 : i32
    %16 = vector.broadcast %c32_i32 : i32 to vector<128x128xi32>
    %17 = arith.cmpi slt, %15, %16 : vector<128x128xi32>
    %cst_10 = arith.constant 0.000000e+00 : f32
    %18 = vector.broadcast %cst_10 : f32 to vector<128x128xf32>
    %19 = arith.select %17, %7, %18 : vector<128x128xi1>, vector<128x128xf32>
    %cst_11 = arith.constant dense<0.000000e+00> : vector<128xf32>
    %20 = vector.multi_reduction <add>, %19, %cst_11 [0] : vector<128x128xf32> to vector<128xf32>
    %21 = vector.shape_cast %20 : vector<128xf32> to vector<1x128xf32>
    %c0_12 = arith.constant 0 : index
    %c0_13 = arith.constant 0 : index
    %c0_14 = arith.constant 0 : index
    %c0_15 = arith.constant 0 : index
    %22 = vector.load %arg6[%c0_12, %c0_13, %c0_14, %c0_15] : memref<1x1x1x128xf32, #tpu.memory_space<vmem>>, vector<1x1x1x128xf32>
    %23 = vector.shape_cast %22 : vector<1x1x1x128xf32> to vector<1x128xf32>
    %24 = vector.shape_cast %21 : vector<1x128xf32> to vector<1x1x1x128xf32>
    tpu.vector_store %arg6[%c0_12, %c0_13, %c0_14, %c0_15], %24 {strides = array<i32>} : memref<1x1x1x128xf32, #tpu.memory_space<vmem>>, vector<1x1x1x128xf32>,
    %25 = arith.mulf %19, %19 : vector<128x128xf32>
    %cst_16 = arith.constant dense<0.000000e+00> : vector<128xf32>
    %26 = vector.multi_reduction <add>, %25, %cst_16 [0] : vector<128x128xf32> to vector<128xf32>
    %27 = vector.shape_cast %26 : vector<128xf32> to vector<1x128xf32>
    %c0_17 = arith.constant 0 : index
    %c0_18 = arith.constant 0 : index
    %c0_19 = arith.constant 0 : index
    %c0_20 = arith.constant 0 : index
    %28 = vector.load %arg7[%c0_17, %c0_18, %c0_19, %c0_20] : memref<1x1x1x128xf32, #tpu.memory_space<vmem>>, vector<1x1x1x128xf32>
    %29 = vector.shape_cast %28 : vector<1x1x1x128xf32> to vector<1x128xf32>
    %30 = vector.shape_cast %27 : vector<1x128xf32> to vector<1x1x1x128xf32>
    tpu.vector_store %arg7[%c0_17, %c0_18, %c0_19, %c0_20], %30 {strides = array<i32>} : memref<1x1x1x128xf32, #tpu.memory_space<vmem>>, vector<1x1x1x128xf32>,
    return
  }
  func.func @transform_0(%arg0: i32, %arg1: i32) -> (i32, i32, i32) {
    %c0_i32 = arith.constant 0 : i32
    %c0_i32_0 = arith.constant 0 : i32
    return %arg0, %arg1, %c0_i32 : i32, i32, i32
  }
  func.func @transform_1(%arg0: i32, %arg1: i32) -> (i32, i32, i32) {
    %c0_i32 = arith.constant 0 : i32
    %c0_i32_0 = arith.constant 0 : i32
    %c0_i32_1 = arith.constant 0 : i32
    return %arg0, %c0_i32, %c0_i32_0 : i32, i32, i32
  }
  func.func @transform_2(%arg0: i32, %arg1: i32) -> (i32, i32) {
    %c0_i32 = arith.constant 0 : i32
    %c0_i32_0 = arith.constant 0 : i32
    %c0_i32_1 = arith.constant 0 : i32
    return %c0_i32, %c0_i32_0 : i32, i32
  }
  func.func @transform_3(%arg0: i32, %arg1: i32) -> (i32, i32, i32) {
    %c0_i32 = arith.constant 0 : i32
    %c0_i32_0 = arith.constant 0 : i32
    return %arg0, %arg1, %c0_i32 : i32, i32, i32
  }
  func.func @transform_4(%arg0: i32, %arg1: i32) -> (i32, i32, i32, i32) {
    %c0_i32 = arith.constant 0 : i32
    %c0_i32_0 = arith.constant 0 : i32
    %c0_i32_1 = arith.constant 0 : i32
    return %arg0, %arg1, %c0_i32, %c0_i32_0 : i32, i32, i32, i32
  }
  func.func @transform_5(%arg0: i32, %arg1: i32) -> (i32, i32, i32, i32) {
    %c0_i32 = arith.constant 0 : i32
    %c0_i32_0 = arith.constant 0 : i32
    %c0_i32_1 = arith.constant 0 : i32
    return %arg0, %arg1, %c0_i32, %c0_i32_0 : i32, i32, i32, i32
  }
}

module attributes {stable_mosaic.version = 11 : i64} {
  func.func @_fused_gemm_kernel(%arg0: i32, %arg1: i32, %arg2: memref<1x128x768xbf16, #tpu.memory_space<vmem>>, %arg3: memref<1x768x128xbf16, #tpu.memory_space<vmem>>, %arg4: memref<1x128xf32, #tpu.memory_space<vmem>>, %arg5: memref<1x128x128xbf16, #tpu.memory_space<vmem>>, %arg6: memref<1x1x1x128xf32, #tpu.memory_space<vmem>>, %arg7: memref<1x1x1x128xf32, #tpu.memory_space<vmem>>) attributes {dimension_semantics = [#tpu.dimension_semantics<parallel>, #tpu.dimension_semantics<parallel>], iteration_bounds = array<i64: 2, 1>, scalar_prefetch = 0 : i64, scratch_operands = 0 : i64, tpu.core_type = #tpu.core_type<tc>, window_params = [{transform_indices = @transform_0, window_bounds = array<i64: 1, 128, 768>}, {transform_indices = @transform_1, window_bounds = array<i64: 1, 768, 128>}, {pipeline_mode = #tpu.pipeline_mode<synchronous>, transform_indices = @transform_2, window_bounds = array<i64: 1, 128>}, {transform_indices = @transform_3, window_bounds = array<i64: 1, 128, 128>}, {transform_indices = @transform_4, window_bounds = array<i64: 1, 1, 1, 128>}, {transform_indices = @transform_5, window_bounds = array<i64: 1, 1, 1, 128>}]} {
    %c0 = arith.constant 0 : index
    %c0_0 = arith.constant 0 : index
    %c0_1 = arith.constant 0 : index
    %0 = vector.load %arg2[%c0, %c0_0, %c0_1] : memref<1x128x768xbf16, #tpu.memory_space<vmem>>, vector<1x128x768xbf16>
    %1 = vector.shape_cast %0 : vector<1x128x768xbf16> to vector<128x768xbf16>
    %c0_2 = arith.constant 0 : index
    %c0_3 = arith.constant 0 : index
    %c0_4 = arith.constant 0 : index
    %2 = vector.load %arg3[%c0_2, %c0_3, %c0_4] : memref<1x768x128xbf16, #tpu.memory_space<vmem>>, vector<1x768x128xbf16>
    %3 = vector.shape_cast %2 : vector<1x768x128xbf16> to vector<768x128xbf16>
    %cst = arith.constant dense<0.000000e+00> : vector<128x128xf32>
    %4 = tpu.matmul %1, %3, %cst {dimension_numbers = #tpu.dot_dimension_numbers<[1], [0], [0], [1], [0, 0, 1, 1], [], []>} : vector<128x768xbf16>, vector<768x128xbf16>, vector<128x128xf32> -> vector<128x128xf32>
    %c0_5 = arith.constant 0 : index
    %c0_6 = arith.constant 0 : index
    %5 = vector.load %arg4[%c0_5, %c0_6] : memref<1x128xf32, #tpu.memory_space<vmem>>, vector<1x128xf32>
    %6 = vector.broadcast %5 : vector<1x128xf32> to vector<128x128xf32>
    %7 = arith.addf %4, %6 : vector<128x128xf32>
    %8 = arith.truncf %7 : vector<128x128xf32> to vector<128x128xbf16>
    %c0_7 = arith.constant 0 : index
    %c0_8 = arith.constant 0 : index
    %c0_9 = arith.constant 0 : index
    %9 = vector.load %arg5[%c0_7, %c0_8, %c0_9] : memref<1x128x128xbf16, #tpu.memory_space<vmem>>, vector<1x128x128xbf16>
    %10 = vector.shape_cast %9 : vector<1x128x128xbf16> to vector<128x128xbf16>
    %11 = vector.shape_cast %8 : vector<128x128xbf16> to vector<1x128x128xbf16>
    tpu.vector_store %arg5[%c0_7, %c0_8, %c0_9], %11 {strides = array<i32>} : memref<1x128x128xbf16, #tpu.memory_space<vmem>>, vector<1x128x128xbf16>,
    %c128_i32 = arith.constant 128 : i32
    %12 = arith.muli %arg1, %c128_i32 : i32
    %13 = tpu.iota {dimensions = array<i32: 0>} : vector<128x128xi32>
    %14 = vector.broadcast %12 : i32 to vector<128x128xi32>
    %15 = arith.addi %14, %13 : vector<128x128xi32>
    %c32_i32 = arith.constant 32 : i32
    %16 = vector.broadcast %c32_i32 : i32 to vector<128x128xi32>
    %17 = arith.cmpi slt, %15, %16 : vector<128x128xi32>
    %cst_10 = arith.constant 0.000000e+00 : f32
    %18 = vector.broadcast %cst_10 : f32 to vector<128x128xf32>
    %19 = arith.select %17, %7, %18 : vector<128x128xi1>, vector<128x128xf32>
    %cst_11 = arith.constant dense<0.000000e+00> : vector<128xf32>
    %20 = vector.multi_reduction <add>, %19, %cst_11 [0] : vector<128x128xf32> to vector<128xf32>
    %21 = vector.shape_cast %20 : vector<128xf32> to vector<1x128xf32>
    %c0_12 = arith.constant 0 : index
    %c0_13 = arith.constant 0 : index
    %c0_14 = arith.constant 0 : index
    %c0_15 = arith.constant 0 : index
    %22 = vector.load %arg6[%c0_12, %c0_13, %c0_14, %c0_15] : memref<1x1x1x128xf32, #tpu.memory_space<vmem>>, vector<1x1x1x128xf32>
    %23 = vector.shape_cast %22 : vector<1x1x1x128xf32> to vector<1x128xf32>
    %24 = vector.shape_cast %21 : vector<1x128xf32> to vector<1x1x1x128xf32>
    tpu.vector_store %arg6[%c0_12, %c0_13, %c0_14, %c0_15], %24 {strides = array<i32>} : memref<1x1x1x128xf32, #tpu.memory_space<vmem>>, vector<1x1x1x128xf32>,
    %25 = arith.mulf %19, %19 : vector<128x128xf32>
    %cst_16 = arith.constant dense<0.000000e+00> : vector<128xf32>
    %26 = vector.multi_reduction <add>, %25, %cst_16 [0] : vector<128x128xf32> to vector<128xf32>
    %27 = vector.shape_cast %26 : vector<128xf32> to vector<1x128xf32>
    %c0_17 = arith.constant 0 : index
    %c0_18 = arith.constant 0 : index
    %c0_19 = arith.constant 0 : index
    %c0_20 = arith.constant 0 : index
    %28 = vector.load %arg7[%c0_17, %c0_18, %c0_19, %c0_20] : memref<1x1x1x128xf32, #tpu.memory_space<vmem>>, vector<1x1x1x128xf32>
    %29 = vector.shape_cast %28 : vector<1x1x1x128xf32> to vector<1x128xf32>
    %30 = vector.shape_cast %27 : vector<1x128xf32> to vector<1x1x1x128xf32>
    tpu.vector_store %arg7[%c0_17, %c0_18, %c0_19, %c0_20], %30 {strides = array<i32>} : memref<1x1x1x128xf32, #tpu.memory_space<vmem>>, vector<1x1x1x128xf32>,
    return
  }
  func.func @transform_0(%arg0: i32, %arg1: i32) -> (i32, i32, i32) {
    %c0_i32 = arith.constant 0 : i32
    %c0_i32_0 = arith.constant 0 : i32
    return %arg0, %arg1, %c0_i32 : i32, i32, i32
  }
  func.func @transform_1(%arg0: i32, %arg1: i32) -> (i32, i32, i32) {
    %c0_i32 = arith.constant 0 : i32
    %c0_i32_0 = arith.constant 0 : i32
    %c0_i32_1 = arith.constant 0 : i32
    return %arg0, %c0_i32, %c0_i32_0 : i32, i32, i32
  }
  func.func @transform_2(%arg0: i32, %arg1: i32) -> (i32, i32) {
    %c0_i32 = arith.constant 0 : i32
    %c0_i32_0 = arith.constant 0 : i32
    %c0_i32_1 = arith.constant 0 : i32
    return %c0_i32, %c0_i32_0 : i32, i32
  }
  func.func @transform_3(%arg0: i32, %arg1: i32) -> (i32, i32, i32) {
    %c0_i32 = arith.constant 0 : i32
    %c0_i32_0 = arith.constant 0 : i32
    return %arg0, %arg1, %c0_i32 : i32, i32, i32
  }
  func.func @transform_4(%arg0: i32, %arg1: i32) -> (i32, i32, i32, i32) {
    %c0_i32 = arith.constant 0 : i32
    %c0_i32_0 = arith.constant 0 : i32
    %c0_i32_1 = arith.constant 0 : i32
    return %arg0, %arg1, %c0_i32, %c0_i32_0 : i32, i32, i32, i32
  }
  func.func @transform_5(%arg0: i32, %arg1: i32) -> (i32, i32, i32, i32) {
    %c0_i32 = arith.constant 0 : i32
    %c0_i32_0 = arith.constant 0 : i32
    %c0_i32_1 = arith.constant 0 : i32
    return %arg0, %arg1, %c0_i32, %c0_i32_0 : i32, i32, i32, i32
  }
}

module attributes {stable_mosaic.version = 11 : i64} {
  func.func @_fused_gemm_kernel(%arg0: i32, %arg1: i32, %arg2: memref<1x128x384xbf16, #tpu.memory_space<vmem>>, %arg3: memref<1x384x6xbf16, #tpu.memory_space<vmem>>, %arg4: memref<1x6xf32, #tpu.memory_space<vmem>>, %arg5: memref<1x128x6xbf16, #tpu.memory_space<vmem>>) attributes {dimension_semantics = [#tpu.dimension_semantics<parallel>, #tpu.dimension_semantics<parallel>], iteration_bounds = array<i64: 2, 1>, scalar_prefetch = 0 : i64, scratch_operands = 0 : i64, tpu.core_type = #tpu.core_type<tc>, window_params = [{transform_indices = @transform_0, window_bounds = array<i64: 1, 128, 384>}, {transform_indices = @transform_1, window_bounds = array<i64: 1, 384, 6>}, {pipeline_mode = #tpu.pipeline_mode<synchronous>, transform_indices = @transform_2, window_bounds = array<i64: 1, 6>}, {transform_indices = @transform_3, window_bounds = array<i64: 1, 128, 6>}]} {
    %c0 = arith.constant 0 : index
    %c0_0 = arith.constant 0 : index
    %c0_1 = arith.constant 0 : index
    %0 = vector.load %arg2[%c0, %c0_0, %c0_1] : memref<1x128x384xbf16, #tpu.memory_space<vmem>>, vector<1x128x384xbf16>
    %1 = vector.shape_cast %0 : vector<1x128x384xbf16> to vector<128x384xbf16>
    %c0_2 = arith.constant 0 : index
    %c0_3 = arith.constant 0 : index
    %c0_4 = arith.constant 0 : index
    %2 = vector.load %arg3[%c0_2, %c0_3, %c0_4] : memref<1x384x6xbf16, #tpu.memory_space<vmem>>, vector<1x384x6xbf16>
    %3 = vector.shape_cast %2 : vector<1x384x6xbf16> to vector<384x6xbf16>
    %cst = arith.constant dense<0.000000e+00> : vector<128x6xf32>
    %4 = tpu.matmul %1, %3, %cst {dimension_numbers = #tpu.dot_dimension_numbers<[1], [0], [0], [1], [0, 0, 1, 1], [], []>} : vector<128x384xbf16>, vector<384x6xbf16>, vector<128x6xf32> -> vector<128x6xf32>
    %c0_5 = arith.constant 0 : index
    %c0_6 = arith.constant 0 : index
    %5 = vector.load %arg4[%c0_5, %c0_6] : memref<1x6xf32, #tpu.memory_space<vmem>>, vector<1x6xf32>
    %6 = vector.broadcast %5 : vector<1x6xf32> to vector<128x6xf32>
    %7 = arith.addf %4, %6 : vector<128x6xf32>
    %8 = math.tanh %7 : vector<128x6xf32>
    %9 = arith.truncf %8 : vector<128x6xf32> to vector<128x6xbf16>
    %c0_7 = arith.constant 0 : index
    %c0_8 = arith.constant 0 : index
    %c0_9 = arith.constant 0 : index
    %10 = vector.load %arg5[%c0_7, %c0_8, %c0_9] : memref<1x128x6xbf16, #tpu.memory_space<vmem>>, vector<1x128x6xbf16>
    %11 = vector.shape_cast %10 : vector<1x128x6xbf16> to vector<128x6xbf16>
    %12 = vector.shape_cast %9 : vector<128x6xbf16> to vector<1x128x6xbf16>
    tpu.vector_store %arg5[%c0_7, %c0_8, %c0_9], %12 {strides = array<i32>} : memref<1x128x6xbf16, #tpu.memory_space<vmem>>, vector<1x128x6xbf16>,
    return
  }
  func.func @transform_0(%arg0: i32, %arg1: i32) -> (i32, i32, i32) {
    %c0_i32 = arith.constant 0 : i32
    %c0_i32_0 = arith.constant 0 : i32
    return %arg0, %arg1, %c0_i32 : i32, i32, i32
  }
  func.func @transform_1(%arg0: i32, %arg1: i32) -> (i32, i32, i32) {
    %c0_i32 = arith.constant 0 : i32
    %c0_i32_0 = arith.constant 0 : i32
    %c0_i32_1 = arith.constant 0 : i32
    return %arg0, %c0_i32, %c0_i32_0 : i32, i32, i32
  }
  func.func @transform_2(%arg0: i32, %arg1: i32) -> (i32, i32) {
    %c0_i32 = arith.constant 0 : i32
    %c0_i32_0 = arith.constant 0 : i32
    %c0_i32_1 = arith.constant 0 : i32
    return %c0_i32, %c0_i32_0 : i32, i32
  }
  func.func @transform_3(%arg0: i32, %arg1: i32) -> (i32, i32, i32) {
    %c0_i32 = arith.constant 0 : i32
    %c0_i32_0 = arith.constant 0 : i32
    return %arg0, %arg1, %c0_i32 : i32, i32, i32
  }
}

</mosaic_0001>

<bundles_post_ra>
// kernel: generator_forward.4
= control target key start
LH: loop header
LB: loop body
LE: loop exit
PB: predicated region body
PF: predicated region fallthrough
CT: control target
= control target key end

     0   :  { %vm102_vm0 = vcmask 392192   ;;  %vm304_vm1 = vcmask 519168   ;;  %s555_s1 = inlined_call_operand.vmem [shape: bf16[1,48,64], index: 1, kind: input, shape index: {}]   ;;  %s556_s0 = inlined_call_operand.vmem [shape: bf16[1,128,48], index: 0, kind: input, shape index: {}]   ;;  %s557_s2 = inlined_call_operand.vmem [shape: f32[1,64], index: 2, kind: input, shape index: {}]   ;;  %s558_s3 = inlined_call_operand.vmem [shape: bf16[1,128,64], index: 3, kind: output, shape index: {}]  }
   0x1   :  { %v416_v0 = vld [vmem:[%s555_s1] sm:$0xff]   ;;  %v417_v1 = vld [vmem:[%s555_s1 + $0x8] sm:$0xff]   ;;  %v418_v2 = vld [vmem:[%s555_s1 + $0x10] sm:$0xff]  }
   0x2   :  { %388 = vmatprep.subr.bf16.mxu0 %v416_v0  ;;  %410 = vmatprep.subr.bf16.mxu1 %v416_v0  ;;  %v419_v3 = vld [vmem:[%s556_s0] sm:$0xff]   ;;  %v421_v5 = vld [vmem:[%s556_s0 + $0x8] sm:$0xff]   ;;  %v423_v7 = vld [vmem:[%s556_s0 + $0x10] sm:$0xff]  }
   0x3   :  { %389 = vmatpush3.bf16.msra.mxu0 %v416_v0  ;;  %413 = vmatpush3.bf16.msra.mxu1 %v416_v0  ;;  %v420_v4 = vld [vmem:[%s556_s0 + $0x20] sm:$0xff]   ;;  %v422_v6 = vld [vmem:[%s556_s0 + $0x28] sm:$0xff]   ;;  %v424_v8 = vld [vmem:[%s556_s0 + $0x30] sm:$0xff]  }
   0x4   :  { %390 = vmatprep.subr.bf16.mxu0 %v417_v1  ;;  %411 = vmatprep.subr.bf16.mxu1 %v417_v1  ;;  %v425_v9 = vld [vmem:[%s556_s0 + $0x18] sm:$0xff]   ;;  %v325_v11 = vld [vmem:[%s557_s2] ss:$0 sm:$0xff] }
   0x5   :  { %394 = vmatprep.mubr.msk.bf16.mxu0 %vm102_vm0, %v419_v3  ;;  %402 = vmatprep.mubr.msk.bf16.mxu1 %vm102_vm0, %v420_v4  ;;  %v426_v10 = vld [vmem:[%s556_s0 + $0x38] sm:$0xff]  }
   0x7   :  { %391 = vmatpush3.bf16.msra.mxu0 %v417_v1  ;;  %414 = vmatpush3.bf16.msra.mxu1 %v417_v1 }
   0x8   :  { %392 = vmatprep.subr.bf16.mxu0 %v418_v2  ;;  %412 = vmatprep.subr.bf16.mxu1 %v418_v2 }
   0xb   :  { %393 = vmatpush3.bf16.msra.mxu0 %v418_v2  ;;  %415 = vmatpush3.bf16.msra.mxu1 %v418_v2 }
   0xe   :  { %395 = vmatmul.mubr.msk.bf16.vlgmr.msra.gmra.mrb[0].mxu0 %vm102_vm0, %v421_v5  ;;  %403 = vmatmul.mubr.msk.bf16.vlgmr.msra.gmra.mrb[0].mxu1 %vm102_vm0, %v422_v6 }
   0xf   :  { %398 = vmatprep.mubr.msk.bf16.mxu0 %vm102_vm0, %v423_v7  ;;  %406 = vmatprep.mubr.msk.bf16.mxu1 %vm102_vm0, %v424_v8 }
  0x16   :  { %399 = vmatmul.mubr.msk.bf16.gmra.mrb[4].mxu0 %vm102_vm0, %v425_v9  ;;  %407 = vmatmul.mubr.msk.bf16.gmra.mrb[4].mxu1 %vm102_vm0, %v426_v10 }
  0xe1   :  { %v396_v12 = vpop.f32.mrb[0].mxu0  ;;  %v404_v13 = vpop.f32.mrb[0].mxu1 }
  0xe2   :  { %v170_v14 = vadd.f32 %v396_v12, %v325_v11  ;;  %v202_v15 = vadd.f32 %v404_v13, %v325_v11  ;;  %v161_v16 = vpop.f32.mrb[1].mxu0  ;;  %v193_v17 = vpop.f32.mrb[1].mxu1 }
  0xe3   :  { %v162_v18 = vadd.f32 %v325_v11, %v161_v16  ;;  %v194_v19 = vadd.f32 %v325_v11, %v193_v17  ;;  %v397_v20 = vpop.f32.mrb[2].mxu0  ;;  %v405_v21 = vpop.f32.mrb[2].mxu1 }
  0xe4   :  { %v226_v22 = vmax.f32 %v170_v14, 0.0  ;;  %v234_v23 = vmax.f32 %v202_v15, 0.0  ;;  %v173_v24 = vadd.f32 %v397_v20, %v325_v11  ;;  %v205_v25 = vadd.f32 %v405_v21, %v325_v11  ;;  %v164_v26 = vpop.f32.mrb[3].mxu0  ;;  %v196_v27 = vpop.f32.mrb[3].mxu1 }
  0xe5   :  { %v224_v28 = vmax.f32 %v162_v18, 0.0  ;;  %v232_v29 = vmax.f32 %v194_v19, 0.0  ;;  %v165_v30 = vadd.f32 %v325_v11, %v164_v26  ;;  %v197_v31 = vadd.f32 %v325_v11, %v196_v27 }
  0xe6   :  { %v363_v32 = vpack.c.bf16 %v226_v22, %v226_v22  ;;  %v371_v33 = vpack.c.bf16 %v234_v23, %v234_v23  ;;  %v227_v34 = vmax.f32 %v173_v24, 0.0  ;;  %v235_v35 = vmax.f32 %v205_v25, 0.0 }
  0xe7   :  { %v361_v36 = vpack.c.bf16 %v224_v28, %v224_v28  ;;  %v369_v37 = vpack.c.bf16 %v232_v29, %v232_v29  ;;  %v225_v38 = vmax.f32 %v165_v30, 0.0  ;;  %v233_v39 = vmax.f32 %v197_v31, 0.0 }
  0xe8   :  { %307 = vst.msk [vmem:[%s558_s3 + $0x8] sm:$0xf] %vm304_vm1, %v363_v32  ;;  %315 = vst.msk [vmem:[%s558_s3 + $0x28] sm:$0xf] %vm304_vm1, %v371_v33  ;;  %v364_v40 = vpack.c.bf16 %v227_v34, %v227_v34  ;;  %v372_v41 = vpack.c.bf16 %v235_v35, %v235_v35 }
  0xe9   :  { %305 = vst.msk [vmem:[%s558_s3] sm:$0xf] %vm304_vm1, %v361_v36  ;;  %313 = vst.msk [vmem:[%s558_s3 + $0x20] sm:$0xf] %vm304_vm1, %v369_v37  ;;  %v362_v42 = vpack.c.bf16 %v225_v38, %v225_v38  ;;  %v370_v43 = vpack.c.bf16 %v233_v39, %v233_v39  ;;  %v400_v44 = vpop.f32.mrb[4].mxu0  ;;  %v408_v45 = vpop.f32.mrb[4].mxu1 }
  0xea   :  { %308 = vst.msk [vmem:[%s558_s3 + $0xc] sm:$0xf] %vm304_vm1, %v364_v40  ;;  %316 = vst.msk [vmem:[%s558_s3 + $0x2c] sm:$0xf] %vm304_vm1, %v372_v41  ;;  %v186_v46 = vadd.f32 %v400_v44, %v325_v11  ;;  %v218_v47 = vadd.f32 %v408_v45, %v325_v11  ;;  %v177_v48 = vpop.f32.mrb[5].mxu0  ;;  %v209_v49 = vpop.f32.mrb[5].mxu1 }
  0xeb   :  { %306 = vst.msk [vmem:[%s558_s3 + $0x4] sm:$0xf] %vm304_vm1, %v362_v42  ;;  %314 = vst.msk [vmem:[%s558_s3 + $0x24] sm:$0xf] %vm304_vm1, %v370_v43  ;;  %v178_v50 = vadd.f32 %v325_v11, %v177_v48  ;;  %v210_v51 = vadd.f32 %v325_v11, %v209_v49  ;;  %v401_v52 = vpop.f32.mrb[6].mxu0  ;;  %v409_v53 = vpop.f32.mrb[6].mxu1 }
  0xec   :  { %v230_v54 = vmax.f32 %v186_v46, 0.0  ;;  %v238_v55 = vmax.f32 %v218_v47, 0.0  ;;  %v189_v56 = vadd.f32 %v401_v52, %v325_v11  ;;  %v221_v57 = vadd.f32 %v409_v53, %v325_v11  ;;  %v180_v58 = vpop.f32.mrb[7].mxu0  ;;  %v212_v59 = vpop.f32.mrb[7].mxu1 }
  0xed   :  { %v228_v60 = vmax.f32 %v178_v50, 0.0  ;;  %v236_v61 = vmax.f32 %v210_v51, 0.0  ;;  %v181_v62 = vadd.f32 %v325_v11, %v180_v58  ;;  %v213_v63 = vadd.f32 %v325_v11, %v212_v59 }
  0xee   :  { %v367_v0 = vpack.c.bf16 %v230_v54, %v230_v54  ;;  %v375_v1 = vpack.c.bf16 %v238_v55, %v238_v55  ;;  %v231_v2 = vmax.f32 %v189_v56, 0.0  ;;  %v239_v3 = vmax.f32 %v221_v57, 0.0 }
  0xef   :  { %v365_v4 = vpack.c.bf16 %v228_v60, %v228_v60  ;;  %v373_v5 = vpack.c.bf16 %v236_v61, %v236_v61  ;;  %v229_v6 = vmax.f32 %v181_v62, 0.0  ;;  %v237_v7 = vmax.f32 %v213_v63, 0.0 }
  0xf0   :  { %311 = vst.msk [vmem:[%s558_s3 + $0x18] sm:$0xf] %vm304_vm1, %v367_v0  ;;  %319 = vst.msk [vmem:[%s558_s3 + $0x38] sm:$0xf] %vm304_vm1, %v375_v1  ;;  %v368_v8 = vpack.c.bf16 %v231_v2, %v231_v2  ;;  %v376_v9 = vpack.c.bf16 %v239_v3, %v239_v3 }
  0xf1   :  { %309 = vst.msk [vmem:[%s558_s3 + $0x10] sm:$0xf] %vm304_vm1, %v365_v4  ;;  %317 = vst.msk [vmem:[%s558_s3 + $0x30] sm:$0xf] %vm304_vm1, %v373_v5  ;;  %v366_v10 = vpack.c.bf16 %v229_v6, %v229_v6  ;;  %v374_v11 = vpack.c.bf16 %v237_v7, %v237_v7 }
  0xf2   :  { %312 = vst.msk [vmem:[%s558_s3 + $0x1c] sm:$0xf] %vm304_vm1, %v368_v8  ;;  %320 = vst.msk [vmem:[%s558_s3 + $0x3c] sm:$0xf] %vm304_vm1, %v376_v9 }
  0xf3   :  { %310 = vst.msk [vmem:[%s558_s3 + $0x14] sm:$0xf] %vm304_vm1, %v366_v10  ;;  %318 = vst.msk [vmem:[%s558_s3 + $0x34] sm:$0xf] %vm304_vm1, %v374_v11 }

// kernel: generator_forward.5
= control target key start
LH: loop header
LB: loop body
LE: loop exit
PB: predicated region body
PF: predicated region fallthrough
CT: control target
= control target key end

     0   :  { %s2569_s1 = inlined_call_operand.vmem [shape: bf16[1,1024,128], index: 1, kind: input, shape index: {}]   ;;  %s2570_s0 = inlined_call_operand.vmem [shape: bf16[1,128,1024], index: 0, kind: input, shape index: {}]   ;;  %s2571_s2 = inlined_call_operand.vmem [shape: f32[1,128], index: 2, kind: input, shape index: {}]   ;;  %s2572_s3 = inlined_call_operand.vmem [shape: bf16[1,128,128], index: 3, kind: output, shape index: {0}]   ;;  %s2573_s4 = inlined_call_operand.vmem [shape: f32[1,1,1,128], index: 4, kind: output, shape index: {1}]   ;;  %s2574_s5 = inlined_call_operand.vmem [shape: f32[1,1,1,128], index: 5, kind: output, shape index: {2}]  }
   0x1   :  { %v1992_v0 = vld [vmem:[%s2569_s1 + $0x40] sm:$0xff]   ;;  %v1996_v4 = vld [vmem:[%s2569_s1 + $0x48] sm:$0xff]   ;;  %v2000_v8 = vld [vmem:[%s2569_s1 + $0x50] sm:$0xff]  }
   0x2   :  { %v1993_v1 = vld [vmem:[%s2569_s1 + $0xc0] sm:$0xff]   ;;  %1736 = vmatprep.subr.bf16.mxu0 %v1992_v0  ;;  %v1997_v5 = vld [vmem:[%s2569_s1 + $0xc8] sm:$0xff]   ;;  %v2001_v9 = vld [vmem:[%s2569_s1 + $0xd0] sm:$0xff]  }
   0x3   :  { %v1994_v2 = vld [vmem:[%s2569_s1] sm:$0xff]   ;;  %1800 = vmatprep.subr.bf16.mxu1 %v1993_v1  ;;  %v1998_v6 = vld [vmem:[%s2569_s1 + $0x8] sm:$0xff]   ;;  %v2002_v10 = vld [vmem:[%s2569_s1 + $0x10] sm:$0xff]  }
   0x4   :  { %v1995_v3 = vld [vmem:[%s2569_s1 + $0x80] sm:$0xff]   ;;  %1737 = vmatpush3.bf16.msra.mxu0 %v1994_v2  ;;  %v1999_v7 = vld [vmem:[%s2569_s1 + $0x88] sm:$0xff]   ;;  %v2003_v11 = vld [vmem:[%s2569_s1 + $0x90] sm:$0xff]  }
   0x5   :  { %1801 = vmatpush3.bf16.msra.mxu1 %v1995_v3  ;;  %1738 = vmatprep.subr.bf16.mxu0 %v1996_v4  ;;  %v2004_v12 = vld [vmem:[%s2569_s1 + $0x58] sm:$0xff]   ;;  %v2008_v16 = vld [vmem:[%s2569_s1 + $0x60] sm:$0xff]   ;;  %v2012_v20 = vld [vmem:[%s2569_s1 + $0x68] sm:$0xff]  }
   0x6   :  { %1802 = vmatprep.subr.bf16.mxu1 %v1997_v5  ;;  %v2005_v13 = vld [vmem:[%s2569_s1 + $0xd8] sm:$0xff]   ;;  %v2009_v17 = vld [vmem:[%s2569_s1 + $0xe0] sm:$0xff]   ;;  %v2013_v21 = vld [vmem:[%s2569_s1 + $0xe8] sm:$0xff]  }
   0x7   :  { %v2006_v14 = vld [vmem:[%s2569_s1 + $0x18] sm:$0xff]   ;;  %v2010_v18 = vld [vmem:[%s2569_s1 + $0x20] sm:$0xff]   ;;  %v2014_v22 = vld [vmem:[%s2569_s1 + $0x28] sm:$0xff]  }
   0x8   :  { %1739 = vmatpush3.bf16.msra.mxu0 %v1998_v6  ;;  %v2007_v15 = vld [vmem:[%s2569_s1 + $0x98] sm:$0xff]   ;;  %v2011_v19 = vld [vmem:[%s2569_s1 + $0xa0] sm:$0xff]   ;;  %v2015_v23 = vld [vmem:[%s2569_s1 + $0xa8] sm:$0xff]  }
   0x9   :  { %1803 = vmatpush3.bf16.msra.mxu1 %v1999_v7  ;;  %1740 = vmatprep.subr.bf16.mxu0 %v2000_v8  ;;  %v2016_v24 = vld [vmem:[%s2569_s1 + $0x70] sm:$0xff]   ;;  %v2020_v28 = vld [vmem:[%s2569_s1 + $0x78] sm:$0xff]   ;;  %v18_v32 = vld [vmem:[%s2570_s0] sm:$0xff] }
   0xa   :  { %1804 = vmatprep.subr.bf16.mxu1 %v2001_v9  ;;  %v2017_v25 = vld [vmem:[%s2569_s1 + $0xf0] sm:$0xff]   ;;  %v2021_v29 = vld [vmem:[%s2569_s1 + $0xf8] sm:$0xff]   ;;  %v22_v33 = vld [vmem:[%s2570_s0 + $0x20] sm:$0xff] }
   0xb   :  { %v2018_v26 = vld [vmem:[%s2569_s1 + $0x30] sm:$0xff]   ;;  %v2022_v30 = vld [vmem:[%s2569_s1 + $0x38] sm:$0xff]   ;;  %v19_v34 = vld [vmem:[%s2570_s0 + $0x8] sm:$0xff]  ;;  %v1529_v35 = vcombine.low %v18_v32, %v22_v33  ;;  %v1530_v36 = vcombine.high %v18_v32, %v22_v33 }
   0xc   :  { %1741 = vmatpush3.bf16.msra.mxu0 %v2002_v10  ;;  %v2019_v27 = vld [vmem:[%s2569_s1 + $0xb0] sm:$0xff]   ;;  %v2023_v31 = vld [vmem:[%s2569_s1 + $0xb8] sm:$0xff]   ;;  %v23_v37 = vld [vmem:[%s2570_s0 + $0x28] sm:$0xff] }
   0xd   :  { %1805 = vmatpush3.bf16.msra.mxu1 %v2003_v11  ;;  %1742 = vmatprep.subr.bf16.mxu0 %v2004_v12  ;;  %v1531_v38 = vcombine.low %v19_v34, %v23_v37  ;;  %v1532_v39 = vcombine.high %v19_v34, %v23_v37  ;;  %v2024_v40 = vld [vmem:[%s2569_s1 + $0x140] sm:$0xff]   ;;  %v27_v47 = vld [vmem:[%s2570_s0 + $0x48] sm:$0xff]  ;;  %v2032_v62 = vld [vmem:[%s2569_s1 + $0x150] sm:$0xff]  }
   0xe   :  { %1806 = vmatprep.subr.bf16.mxu1 %v2005_v13  ;;  %953 = vmatprep.mubr.bf16.mxu0 %v1530_v36  ;;  %v2025_v41 = vld [vmem:[%s2569_s1 + $0x100] sm:$0xff]   ;;  %v31_v48 = vld [vmem:[%s2570_s0 + $0x68] sm:$0xff]  ;;  %v2033_v63 = vld [vmem:[%s2569_s1 + $0x110] sm:$0xff]  }
   0xf   :  { %1050 = vmatprep.mubr.bf16.mxu1 %v1532_v39  ;;  %v2026_v42 = vld [vmem:[%s2569_s1 + $0x1c0] sm:$0xff]   ;;  %v1540_v49 = vcombine.high %v27_v47, %v31_v48  ;;  %v2028_v50 = vld [vmem:[%s2569_s1 + $0x148] sm:$0xff]   ;;  %v1539_v53 = vcombine.low %v27_v47, %v31_v48  ;;  %v2034_v0 = vld [vmem:[%s2569_s1 + $0x1d0] sm:$0xff]  }
  0x10   :  { %1743 = vmatpush3.bf16.msra.mxu0 %v2006_v14  ;;  %v2027_v43 = vld [vmem:[%s2569_s1 + $0x180] sm:$0xff]   ;;  %v2029_v52 = vld [vmem:[%s2569_s1 + $0x108] sm:$0xff]   ;;  %v2035_v1 = vld [vmem:[%s2569_s1 + $0x190] sm:$0xff]  }
  0x11   :  { %1807 = vmatpush3.bf16.msra.mxu1 %v2007_v15  ;;  %1744 = vmatprep.subr.bf16.mxu0 %v2008_v16  ;;  %v26_v44 = vld [vmem:[%s2570_s0 + $0x40] sm:$0xff]  ;;  %v2030_v54 = vld [vmem:[%s2569_s1 + $0x1c8] sm:$0xff]   ;;  %v2036_v10 = vld [vmem:[%s2569_s1 + $0x158] sm:$0xff]  }
  0x12   :  { %1808 = vmatprep.subr.bf16.mxu1 %v2009_v17  ;;  %v30_v45 = vld [vmem:[%s2570_s0 + $0x60] sm:$0xff]  ;;  %v2031_v55 = vld [vmem:[%s2569_s1 + $0x188] sm:$0xff]   ;;  %v2037_v11 = vld [vmem:[%s2569_s1 + $0x118] sm:$0xff]  }
  0x13   :  { %v1538_v46 = vcombine.high %v26_v44, %v30_v45  ;;  %v1537_v51 = vcombine.low %v26_v44, %v30_v45  ;;  %v34_v56 = vld [vmem:[%s2570_s0 + $0x80] sm:$0xff]  ;;  %v35_v58 = vld [vmem:[%s2570_s0 + $0x88] sm:$0xff]  ;;  %v2038_v12 = vld [vmem:[%s2569_s1 + $0x1d8] sm:$0xff]  }
  0x14   :  { %1745 = vmatpush3.bf16.msra.mxu0 %v2010_v18  ;;  %v38_v57 = vld [vmem:[%s2570_s0 + $0xa0] sm:$0xff]  ;;  %v39_v59 = vld [vmem:[%s2570_s0 + $0xa8] sm:$0xff]  ;;  %v2039_v13 = vld [vmem:[%s2569_s1 + $0x198] sm:$0xff]  }
  0x15   :  { %1809 = vmatpush3.bf16.msra.mxu1 %v2011_v19  ;;  %1746 = vmatprep.subr.bf16.mxu0 %v2012_v20  ;;  %v1546_v60 = vcombine.high %v34_v56, %v38_v57  ;;  %v1548_v61 = vcombine.high %v35_v58, %v39_v59  ;;  %v1545_v2 = vcombine.low %v34_v56, %v38_v57  ;;  %v42_v3 = vld [vmem:[%s2570_s0 + $0xc0] sm:$0xff]  ;;  %v43_v5 = vld [vmem:[%s2570_s0 + $0xc8] sm:$0xff]  ;;  %v2049_v39 = vld [vmem:[%s2569_s1 + $0x130] sm:$0xff]  }
  0x16   :  { %1810 = vmatprep.subr.bf16.mxu1 %v2013_v21  ;;  %v46_v4 = vld [vmem:[%s2570_s0 + $0xe0] sm:$0xff]  ;;  %v1547_v6 = vcombine.low %v35_v58, %v39_v59  ;;  %v47_v8 = vld [vmem:[%s2570_s0 + $0xe8] sm:$0xff]  ;;  %v2053_v48 = vld [vmem:[%s2569_s1 + $0x138] sm:$0xff]  }
  0x17   :  { %v1554_v7 = vcombine.high %v42_v3, %v46_v4  ;;  %v1556_v9 = vcombine.high %v43_v5, %v47_v8  ;;  %v50_v14 = vld [vmem:[%s2570_s0 + $0x100] sm:$0xff]  ;;  %v51_v16 = vld [vmem:[%s2570_s0 + $0x108] sm:$0xff]  ;;  %v1553_v19 = vcombine.low %v42_v3, %v46_v4  ;;  %v1555_v21 = vcombine.low %v43_v5, %v47_v8  ;;  %v29_v8 = vld [vmem:[%s2570_s0 + $0x58] sm:$0xff] }
  0x18   :  { %1747 = vmatpush3.bf16.msra.mxu0 %v2014_v22  ;;  %v54_v15 = vld [vmem:[%s2570_s0 + $0x120] sm:$0xff]  ;;  %v55_v17 = vld [vmem:[%s2570_s0 + $0x128] sm:$0xff] }
  0x19   :  { %1811 = vmatpush3.bf16.msra.mxu1 %v2015_v23  ;;  %1748 = vmatprep.subr.bf16.mxu0 %v2016_v24  ;;  %v2040_v18 = vld [vmem:[%s2569_s1 + $0x160] sm:$0xff]   ;;  %v1562_v22 = vcombine.high %v50_v14, %v54_v15  ;;  %v1564_v24 = vcombine.high %v51_v16, %v55_v17  ;;  %v2046_v32 = vld [vmem:[%s2569_s1 + $0x1e8] sm:$0xff]   ;;  %v1561_v34 = vcombine.low %v50_v14, %v54_v15  ;;  %v36_v14 = vld [vmem:[%s2570_s0 + $0x90] sm:$0xff] }
  0x1a   :  { %1812 = vmatprep.subr.bf16.mxu1 %v2017_v25  ;;  %v2041_v20 = vld [vmem:[%s2569_s1 + $0x120] sm:$0xff]   ;;  %v2047_v33 = vld [vmem:[%s2569_s1 + $0x1a8] sm:$0xff]   ;;  %v40_v15 = vld [vmem:[%s2570_s0 + $0xb0] sm:$0xff] }
  0x1b   :  { %v2042_v23 = vld [vmem:[%s2569_s1 + $0x1e0] sm:$0xff]   ;;  %v67_v44 = vld [vmem:[%s2570_s0 + $0x188] sm:$0xff] }
  0x1c   :  { %1749 = vmatpush3.bf16.msra.mxu0 %v2018_v26  ;;  %v2043_v25 = vld [vmem:[%s2569_s1 + $0x1a0] sm:$0xff]   ;;  %v71_v45 = vld [vmem:[%s2570_s0 + $0x1a8] sm:$0xff] }
  0x1d   :  { %1813 = vmatpush3.bf16.msra.mxu1 %v2019_v27  ;;  %1750 = vmatprep.subr.bf16.mxu0 %v2020_v28  ;;  %v58_v26 = vld [vmem:[%s2570_s0 + $0x140] sm:$0xff]  ;;  %v2044_v28 = vld [vmem:[%s2569_s1 + $0x168] sm:$0xff]   ;;  %v1579_v59 = vcombine.low %v67_v44, %v71_v45 }
  0x1e   :  { %1814 = vmatprep.subr.bf16.mxu1 %v2021_v29  ;;  %v62_v27 = vld [vmem:[%s2570_s0 + $0x160] sm:$0xff]  ;;  %v59_v29 = vld [vmem:[%s2570_s0 + $0x148] sm:$0xff] }
  0x1f   :  { %v1570_v36 = vcombine.high %v58_v26, %v62_v27  ;;  %v1569_v47 = vcombine.low %v58_v26, %v62_v27  ;;  %v75_v56 = vld [vmem:[%s2570_s0 + $0x1c8] sm:$0xff]  ;;  %v1549_v26 = vcombine.low %v36_v14, %v40_v15 }
  0x20   :  { %1751 = vmatpush3.bf16.msra.mxu0 %v2022_v30  ;;  %v63_v30 = vld [vmem:[%s2570_s0 + $0x168] sm:$0xff] }
  0x21   :  { %1815 = vmatpush3.bf16.msra.mxu1 %v2023_v31  ;;  %1864 = vmatprep.subr.bf16.mxu0 %v2024_v40  ;;  %v2045_v31 = vld [vmem:[%s2569_s1 + $0x128] sm:$0xff]   ;;  %v1572_v37 = vcombine.high %v59_v29, %v63_v30  ;;  %v2050_v40 = vld [vmem:[%s2569_s1 + $0x1f0] sm:$0xff]  }
  0x22   :  { %1928 = vmatprep.subr.bf16.mxu1 %v2026_v42  ;;  %v70_v42 = vld [vmem:[%s2570_s0 + $0x1a0] sm:$0xff]  ;;  %v79_v57 = vld [vmem:[%s2570_s0 + $0x1e8] sm:$0xff] }
  0x23   :  { %954 = vmatmul.mubr.bf16.vlgmr.msra.gmra.mrb[0].mxu0 %v1529_v35  ;;  %v1563_v35 = vcombine.low %v51_v16, %v55_v17  ;;  %v1587_v3 = vcombine.low %v75_v56, %v79_v57  ;;  %v37_v16 = vld [vmem:[%s2570_s0 + $0x98] sm:$0xff] }
  0x24   :  { %1051 = vmatmul.mubr.bf16.vlgmr.msra.gmra.mrb[0].mxu1 %v1531_v38  ;;  %1865 = vmatpush3.bf16.msra.mxu0 %v2025_v41  ;;  %v2048_v38 = vld [vmem:[%s2569_s1 + $0x170] sm:$0xff]   ;;  %v66_v41 = vld [vmem:[%s2570_s0 + $0x180] sm:$0xff]  ;;  %v41_v17 = vld [vmem:[%s2570_s0 + $0xb8] sm:$0xff] }
  0x25   :  { %1929 = vmatpush3.bf16.msra.mxu1 %v2027_v43  ;;  %961 = vmatprep.mubr.bf16.mxu0 %v1538_v46  ;;  %v2051_v43 = vld [vmem:[%s2569_s1 + $0x1b0] sm:$0xff]   ;;  %v2052_v46 = vld [vmem:[%s2569_s1 + $0x178] sm:$0xff]   ;;  %v1577_v58 = vcombine.low %v66_v41, %v70_v42  ;;  %v1551_v27 = vcombine.low %v37_v16, %v41_v17 }
  0x26   :  { %1058 = vmatprep.mubr.bf16.mxu1 %v1540_v49  ;;  %1866 = vmatprep.subr.bf16.mxu0 %v2028_v50  ;;  %v1571_v49 = vcombine.low %v59_v29, %v63_v30  ;;  %v1578_v50 = vcombine.high %v66_v41, %v70_v42  ;;  %v52_v30 = vld [vmem:[%s2570_s0 + $0x110] sm:$0xff]  ;;  %v65_v41 = vld [vmem:[%s2570_s0 + $0x178] sm:$0xff] }
  0x27   :  { %1930 = vmatprep.subr.bf16.mxu1 %v2030_v54  ;;  %v74_v54 = vld [vmem:[%s2570_s0 + $0x1c0] sm:$0xff] }
  0x28   :  { %1867 = vmatpush3.bf16.msra.mxu0 %v2029_v52  ;;  %v1580_v52 = vcombine.high %v67_v44, %v71_v45 }
  0x29   :  { %1931 = vmatpush3.bf16.msra.mxu1 %v2031_v55  ;;  %1868 = vmatprep.subr.bf16.mxu0 %v2032_v62  ;;  %v78_v55 = vld [vmem:[%s2570_s0 + $0x1e0] sm:$0xff]  ;;  %v20_v62 = vld [vmem:[%s2570_s0 + $0x10] sm:$0xff] }
  0x2a   :  { %1932 = vmatprep.subr.bf16.mxu1 %v2034_v0  ;;  %v21_v0 = vld [vmem:[%s2570_s0 + $0x18] sm:$0xff] }
  0x2b   :  { %962 = vmatmul.mubr.bf16.gmra.mrb[4].mxu0 %v1537_v51  ;;  %v2054_v51 = vld [vmem:[%s2569_s1 + $0x1f8] sm:$0xff]  }
  0x2c   :  { %1059 = vmatmul.mubr.bf16.gmra.mrb[4].mxu1 %v1539_v53  ;;  %969 = vmatprep.mubr.bf16.mxu0 %v1546_v60  ;;  %v2055_v53 = vld [vmem:[%s2569_s1 + $0x1b8] sm:$0xff]   ;;  %v1586_v60 = vcombine.high %v74_v54, %v78_v55 }
  0x2d   :  { %1066 = vmatprep.mubr.bf16.mxu1 %v1548_v61  ;;  %1869 = vmatpush3.bf16.msra.mxu0 %v2033_v63  ;;  %v1588_v61 = vcombine.high %v75_v56, %v79_v57  ;;  %v24_v63 = vld [vmem:[%s2570_s0 + $0x30] sm:$0xff]  ;;  %v77_v56 = vld [vmem:[%s2570_s0 + $0x1d8] sm:$0xff] }
  0x2e   :  { %1933 = vmatpush3.bf16.msra.mxu1 %v2035_v1  ;;  %1870 = vmatprep.subr.bf16.mxu0 %v2036_v10  ;;  %v25_v1 = vld [vmem:[%s2570_s0 + $0x38] sm:$0xff]  ;;  %v1534_v4 = vcombine.high %v20_v62, %v24_v63  ;;  %v1533_v10 = vcombine.low %v20_v62, %v24_v63 }
  0x2f   :  { %1934 = vmatprep.subr.bf16.mxu1 %v2038_v12  ;;  %v1536_v5 = vcombine.high %v21_v0, %v25_v1  ;;  %v81_v57 = vld [vmem:[%s2570_s0 + $0x1f8] sm:$0xff] }
  0x30   :  { %v1591_v63 = vcombine.low %v77_v56, %v81_v57 }
  0x31   :  { %1871 = vmatpush3.bf16.msra.mxu0 %v2037_v11  ;;  %v1535_v11 = vcombine.low %v21_v0, %v25_v1 }
  0x32   :  { %1935 = vmatpush3.bf16.msra.mxu1 %v2039_v13  ;;  %1872 = vmatprep.subr.bf16.mxu0 %v2040_v18 }
  0x33   :  { %970 = vmatmul.mubr.bf16.gmra.mrb[8].mxu0 %v1545_v2  ;;  %1936 = vmatprep.subr.bf16.mxu1 %v2042_v23  ;;  %v1585_v2 = vcombine.low %v74_v54, %v78_v55  ;;  %v48_v23 = vld [vmem:[%s2570_s0 + $0xf0] sm:$0xff] }
  0x34   :  { %1067 = vmatmul.mubr.bf16.gmra.mrb[8].mxu1 %v1547_v6  ;;  %977 = vmatprep.mubr.bf16.mxu0 %v1554_v7  ;;  %v28_v6 = vld [vmem:[%s2570_s0 + $0x50] sm:$0xff] }
  0x35   :  { %1074 = vmatprep.mubr.bf16.mxu1 %v1556_v9  ;;  %1873 = vmatpush3.bf16.msra.mxu0 %v2041_v20  ;;  %v32_v7 = vld [vmem:[%s2570_s0 + $0x70] sm:$0xff]  ;;  %v33_v9 = vld [vmem:[%s2570_s0 + $0x78] sm:$0xff]  ;;  %v1550_v20 = vcombine.high %v36_v14, %v40_v15 }
  0x36   :  { %1937 = vmatpush3.bf16.msra.mxu1 %v2043_v25  ;;  %1874 = vmatprep.subr.bf16.mxu0 %v2044_v28  ;;  %v1542_v12 = vcombine.high %v28_v6, %v32_v7  ;;  %v1544_v13 = vcombine.high %v29_v8, %v33_v9  ;;  %v1541_v18 = vcombine.low %v28_v6, %v32_v7  ;;  %v49_v25 = vld [vmem:[%s2570_s0 + $0xf8] sm:$0xff]  ;;  %v76_v54 = vld [vmem:[%s2570_s0 + $0x1d0] sm:$0xff] }
  0x37   :  { %1938 = vmatprep.subr.bf16.mxu1 %v2046_v32  ;;  %v53_v32 = vld [vmem:[%s2570_s0 + $0x118] sm:$0xff]  ;;  %v80_v55 = vld [vmem:[%s2570_s0 + $0x1f0] sm:$0xff] }
  0x38   :  { %v1589_v62 = vcombine.low %v76_v54, %v80_v55 }
  0x39   :  { %1875 = vmatpush3.bf16.msra.mxu0 %v2045_v31  ;;  %v56_v31 = vld [vmem:[%s2570_s0 + $0x130] sm:$0xff] }
  0x3a   :  { %1939 = vmatpush3.bf16.msra.mxu1 %v2047_v33  ;;  %1876 = vmatprep.subr.bf16.mxu0 %v2048_v38  ;;  %v57_v33 = vld [vmem:[%s2570_s0 + $0x138] sm:$0xff]  ;;  %v60_v38 = vld [vmem:[%s2570_s0 + $0x150] sm:$0xff]  ;;  %v1565_v42 = vcombine.low %v52_v30, %v56_v31 }
  0x3b   :  { %978 = vmatmul.mubr.bf16.gmra.mrb[12].mxu0 %v1553_v19  ;;  %1940 = vmatprep.subr.bf16.mxu1 %v2050_v40  ;;  %v1543_v19 = vcombine.low %v29_v8, %v33_v9  ;;  %v61_v40 = vld [vmem:[%s2570_s0 + $0x158] sm:$0xff] }
  0x3c   :  { %1075 = vmatmul.mubr.bf16.gmra.mrb[12].mxu1 %v1555_v21  ;;  %985 = vmatprep.mubr.bf16.mxu0 %v1562_v22  ;;  %v1552_v21 = vcombine.high %v37_v16, %v41_v17  ;;  %v44_v22 = vld [vmem:[%s2570_s0 + $0xd0] sm:$0xff]  ;;  %v1576_v45 = vcombine.high %v61_v40, %v65_v41 }
  0x3d   :  { %1082 = vmatprep.mubr.bf16.mxu1 %v1564_v24  ;;  %1877 = vmatpush3.bf16.msra.mxu0 %v2049_v39  ;;  %v45_v24 = vld [vmem:[%s2570_s0 + $0xd8] sm:$0xff]  ;;  %v1558_v28 = vcombine.high %v44_v22, %v48_v23  ;;  %v64_v39 = vld [vmem:[%s2570_s0 + $0x170] sm:$0xff] }
  0x3e   :  { %1941 = vmatpush3.bf16.msra.mxu1 %v2051_v43  ;;  %1878 = vmatprep.subr.bf16.mxu0 %v2052_v46  ;;  %v1560_v29 = vcombine.high %v45_v24, %v49_v25  ;;  %v1567_v43 = vcombine.low %v53_v32, %v57_v33  ;;  %v1574_v44 = vcombine.high %v60_v38, %v64_v39  ;;  %v68_v46 = vld [vmem:[%s2570_s0 + $0x190] sm:$0xff] }
  0x3f   :  { %1942 = vmatprep.subr.bf16.mxu1 %v2054_v51  ;;  %v1575_v51 = vcombine.low %v61_v40, %v65_v41 }
  0x41   :  { %1879 = vmatpush3.bf16.msra.mxu0 %v2053_v48  ;;  %v69_v48 = vld [vmem:[%s2570_s0 + $0x198] sm:$0xff] }
  0x42   :  { %1943 = vmatpush3.bf16.msra.mxu1 %v2055_v53 }
  0x43   :  { %986 = vmatmul.mubr.bf16.gmra.mrb[16].mxu0 %v1561_v34  ;;  %v1557_v34 = vcombine.low %v44_v22, %v48_v23 }
  0x44   :  { %1083 = vmatmul.mubr.bf16.gmra.mrb[16].mxu1 %v1563_v35  ;;  %993 = vmatprep.mubr.bf16.mxu0 %v1570_v36  ;;  %v1559_v35 = vcombine.low %v45_v24, %v49_v25  ;;  %v1566_v36 = vcombine.high %v52_v30, %v56_v31 }
  0x45   :  { %1090 = vmatprep.mubr.bf16.mxu1 %v1572_v37  ;;  %v1568_v37 = vcombine.high %v53_v32, %v57_v33 }
  0x4b   :  { %994 = vmatmul.mubr.bf16.gmra.mrb[20].mxu0 %v1569_v47  ;;  %v72_v47 = vld [vmem:[%s2570_s0 + $0x1b0] sm:$0xff] }
  0x4c   :  { %1091 = vmatmul.mubr.bf16.gmra.mrb[20].mxu1 %v1571_v49  ;;  %1001 = vmatprep.mubr.bf16.mxu0 %v1578_v50  ;;  %v73_v49 = vld [vmem:[%s2570_s0 + $0x1b8] sm:$0xff]  ;;  %v1573_v50 = vcombine.low %v60_v38, %v64_v39 }
  0x4d   :  { %1098 = vmatprep.mubr.bf16.mxu1 %v1580_v52  ;;  %v1582_v52 = vcombine.high %v68_v46, %v72_v47  ;;  %v1584_v53 = vcombine.high %v69_v48, %v73_v49 }
  0x53   :  { %1002 = vmatmul.mubr.bf16.gmra.mrb[24].mxu0 %v1577_v58  ;;  %v1581_v58 = vcombine.low %v68_v46, %v72_v47 }
  0x54   :  { %1099 = vmatmul.mubr.bf16.gmra.mrb[24].mxu1 %v1579_v59  ;;  %1009 = vmatprep.mubr.bf16.mxu0 %v1586_v60  ;;  %v1583_v59 = vcombine.low %v69_v48, %v73_v49  ;;  %v1590_v60 = vcombine.high %v76_v54, %v80_v55 }
  0x55   :  { %1106 = vmatprep.mubr.bf16.mxu1 %v1588_v61  ;;  %v1592_v61 = vcombine.high %v77_v56, %v81_v57 }
  0x5b   :  { %1010 = vmatmul.mubr.bf16.gmra.mrb[28].mxu0 %v1585_v2  ;;  %v2473_v2 = vld [vmem:[%s2571_s2] ss:$0 sm:$0xff] }
  0x5c   :  { %1107 = vmatmul.mubr.bf16.gmra.mrb[28].mxu1 %v1587_v3  ;;  %1147 = vmatprep.mubr.bf16.mxu0 %v1534_v4 }
  0x5d   :  { %1244 = vmatprep.mubr.bf16.mxu1 %v1536_v5 }
  0x63   :  { %1148 = vmatmul.mubr.bf16.vlgmr.msra.gmra.mrb[32].mxu0 %v1533_v10 }
  0x64   :  { %1245 = vmatmul.mubr.bf16.vlgmr.msra.gmra.mrb[32].mxu1 %v1535_v11  ;;  %1155 = vmatprep.mubr.bf16.mxu0 %v1542_v12 }
  0x65   :  { %1252 = vmatprep.mubr.bf16.mxu1 %v1544_v13 }
  0x6b   :  { %1156 = vmatmul.mubr.bf16.gmra.mrb[36].mxu0 %v1541_v18 }
  0x6c   :  { %1253 = vmatmul.mubr.bf16.gmra.mrb[36].mxu1 %v1543_v19  ;;  %1163 = vmatprep.mubr.bf16.mxu0 %v1550_v20 }
  0x6d   :  { %1260 = vmatprep.mubr.bf16.mxu1 %v1552_v21 }
  0x73   :  { %1164 = vmatmul.mubr.bf16.gmra.mrb[40].mxu0 %v1549_v26 }
  0x74   :  { %1261 = vmatmul.mubr.bf16.gmra.mrb[40].mxu1 %v1551_v27  ;;  %1171 = vmatprep.mubr.bf16.mxu0 %v1558_v28 }
  0x75   :  { %1268 = vmatprep.mubr.bf16.mxu1 %v1560_v29 }
  0x7b   :  { %1172 = vmatmul.mubr.bf16.gmra.mrb[44].mxu0 %v1557_v34 }
  0x7c   :  { %1269 = vmatmul.mubr.bf16.gmra.mrb[44].mxu1 %v1559_v35  ;;  %1179 = vmatprep.mubr.bf16.mxu0 %v1566_v36 }
  0x7d   :  { %1276 = vmatprep.mubr.bf16.mxu1 %v1568_v37 }
  0x83   :  { %1180 = vmatmul.mubr.bf16.gmra.mrb[48].mxu0 %v1565_v42 }
  0x84   :  { %1277 = vmatmul.mubr.bf16.gmra.mrb[48].mxu1 %v1567_v43  ;;  %1187 = vmatprep.mubr.bf16.mxu0 %v1574_v44 }
  0x85   :  { %1284 = vmatprep.mubr.bf16.mxu1 %v1576_v45 }
  0x8b   :  { %1188 = vmatmul.mubr.bf16.gmra.mrb[52].mxu0 %v1573_v50 }
  0x8c   :  { %1285 = vmatmul.mubr.bf16.gmra.mrb[52].mxu1 %v1575_v51  ;;  %1195 = vmatprep.mubr.bf16.mxu0 %v1582_v52 }
  0x8d   :  { %1292 = vmatprep.mubr.bf16.mxu1 %v1584_v53 }
  0x93   :  { %1196 = vmatmul.mubr.bf16.gmra.mrb[56].mxu0 %v1581_v58 }
  0x94   :  { %1293 = vmatmul.mubr.bf16.gmra.mrb[56].mxu1 %v1583_v59  ;;  %1203 = vmatprep.mubr.bf16.mxu0 %v1590_v60 }
  0x95   :  { %1300 = vmatprep.mubr.bf16.mxu1 %v1592_v61 }
  0x9b   :  { %1204 = vmatmul.mubr.bf16.gmra.mrb[60].mxu0 %v1589_v62 }
  0x9c   :  { %1301 = vmatmul.mubr.bf16.gmra.mrb[60].mxu1 %v1591_v63 }
  0xf6   :  { %v1752_v0 = vpop.f32.mrb[0].mxu0 }
  0xf7   :  { %v1816_v1 = vpop.f32.mrb[0].mxu1  ;;  %v1753_v3 = vpop.f32.mrb[1].mxu0 }
  0xf8   :  { %v1754_v4 = vadd.f32 %v1753_v3, %v1752_v0  ;;  %v1817_v5 = vpop.f32.mrb[1].mxu1  ;;  %v1755_v6 = vpop.f32.mrb[2].mxu0 }
  0xf9   :  { %v1818_v7 = vadd.f32 %v1817_v5, %v1816_v1  ;;  %v1819_v8 = vpop.f32.mrb[2].mxu1  ;;  %v1756_v9 = vpop.f32.mrb[3].mxu0 }
  0xfa   :  { %v956_v10 = vadd.f32 %v1754_v4, %v2473_v2  ;;  %v1757_v11 = vadd.f32 %v1756_v9, %v1755_v6  ;;  %v1820_v12 = vpop.f32.mrb[3].mxu1 }
  0xfb   :  { %v1821_v13 = vadd.f32 %v1820_v12, %v1819_v8 }
  0xfc   :  { %v2476_v14 = vadd.f32 %v1818_v7, %v956_v10  ;;  %v959_v15 = vadd.f32 %v1757_v11, %v2473_v2 }
  0xfe   :  { %v2479_v16 = vadd.f32 %v1821_v13, %v959_v15  ;;  %v1758_v17 = vpop.f32.mrb[4].mxu0 }
  0xff   :  { %v1822_v18 = vpop.f32.mrb[4].mxu1  ;;  %v1759_v19 = vpop.f32.mrb[5].mxu0 }
 0x100   :  { %v1760_v20 = vadd.f32 %v1759_v19, %v1758_v17  ;;  %v1823_v21 = vpop.f32.mrb[5].mxu1  ;;  %v1761_v22 = vpop.f32.mrb[6].mxu0 }
 0x101   :  { %v1824_v23 = vadd.f32 %v1823_v21, %v1822_v18  ;;  %v1825_v24 = vpop.f32.mrb[6].mxu1  ;;  %v1762_v25 = vpop.f32.mrb[7].mxu0 }
 0x102   :  { %v964_v26 = vadd.f32 %v1760_v20, %v2473_v2  ;;  %v1763_v27 = vadd.f32 %v1762_v25, %v1761_v22  ;;  %v1826_v28 = vpop.f32.mrb[7].mxu1 }
 0x103   :  { %v1827_v29 = vadd.f32 %v1826_v28, %v1825_v24 }
 0x104   :  { %v2482_v30 = vadd.f32 %v1824_v23, %v964_v26  ;;  %v967_v31 = vadd.f32 %v1763_v27, %v2473_v2 }
 0x106   :  { %v2485_v32 = vadd.f32 %v1827_v29, %v967_v31  ;;  %v1764_v33 = vpop.f32.mrb[8].mxu0 }
 0x107   :  { %v1828_v34 = vpop.f32.mrb[8].mxu1  ;;  %v1765_v35 = vpop.f32.mrb[9].mxu0 }
 0x108   :  { %v1766_v36 = vadd.f32 %v1765_v35, %v1764_v33  ;;  %v1829_v37 = vpop.f32.mrb[9].mxu1  ;;  %v1767_v38 = vpop.f32.mrb[10].mxu0 }
 0x109   :  { %v1830_v39 = vadd.f32 %v1829_v37, %v1828_v34  ;;  %v1831_v40 = vpop.f32.mrb[10].mxu1  ;;  %v1768_v41 = vpop.f32.mrb[11].mxu0 }
 0x10a   :  { %v972_v42 = vadd.f32 %v1766_v36, %v2473_v2  ;;  %v1769_v43 = vadd.f32 %v1768_v41, %v1767_v38  ;;  %v1832_v44 = vpop.f32.mrb[11].mxu1 }
 0x10b   :  { %v1833_v45 = vadd.f32 %v1832_v44, %v1831_v40 }
 0x10c   :  { %v2488_v46 = vadd.f32 %v1830_v39, %v972_v42  ;;  %v975_v47 = vadd.f32 %v1769_v43, %v2473_v2 }
 0x10e   :  { %v2491_v48 = vadd.f32 %v1833_v45, %v975_v47  ;;  %v1770_v49 = vpop.f32.mrb[12].mxu0 }
 0x10f   :  { %v1834_v50 = vpop.f32.mrb[12].mxu1  ;;  %v1771_v51 = vpop.f32.mrb[13].mxu0 }
 0x110   :  { %v1772_v52 = vadd.f32 %v1771_v51, %v1770_v49  ;;  %v1835_v53 = vpop.f32.mrb[13].mxu1  ;;  %v1773_v54 = vpop.f32.mrb[14].mxu0 }
 0x111   :  { %v1836_v55 = vadd.f32 %v1835_v53, %v1834_v50  ;;  %v1837_v56 = vpop.f32.mrb[14].mxu1  ;;  %v1774_v57 = vpop.f32.mrb[15].mxu0 }
 0x112   :  { %v980_v58 = vadd.f32 %v1772_v52, %v2473_v2  ;;  %v1775_v59 = vadd.f32 %v1774_v57, %v1773_v54  ;;  %v1838_v60 = vpop.f32.mrb[15].mxu1 }
 0x113   :  { %v1839_v61 = vadd.f32 %v1838_v60, %v1837_v56 }
 0x114   :  { %v2494_v62 = vadd.f32 %v1836_v55, %v980_v58  ;;  %v983_v63 = vadd.f32 %v1775_v59, %v2473_v2 }
 0x116   :  { %v2497_v0 = vadd.f32 %v1839_v61, %v983_v63  ;;  %v1776_v1 = vpop.f32.mrb[16].mxu0 }
 0x117   :  { %v1840_v3 = vpop.f32.mrb[16].mxu1  ;;  %v1777_v4 = vpop.f32.mrb[17].mxu0 }
 0x118   :  { %v1778_v5 = vadd.f32 %v1777_v4, %v1776_v1  ;;  %v1841_v6 = vpop.f32.mrb[17].mxu1  ;;  %v1779_v7 = vpop.f32.mrb[18].mxu0 }
 0x119   :  { %v1842_v8 = vadd.f32 %v1841_v6, %v1840_v3  ;;  %v1843_v9 = vpop.f32.mrb[18].mxu1  ;;  %v1780_v10 = vpop.f32.mrb[19].mxu0 }
 0x11a   :  { %v988_v11 = vadd.f32 %v1778_v5, %v2473_v2  ;;  %v1781_v12 = vadd.f32 %v1780_v10, %v1779_v7  ;;  %v1844_v13 = vpop.f32.mrb[19].mxu1 }
 0x11b   :  { %v1845_v15 = vadd.f32 %v1844_v13, %v1843_v9 }
 0x11c   :  { %v2500_v17 = vadd.f32 %v1842_v8, %v988_v11  ;;  %v991_v18 = vadd.f32 %v1781_v12, %v2473_v2 }
 0x11e   :  { %v2503_v19 = vadd.f32 %v1845_v15, %v991_v18  ;;  %v1782_v20 = vpop.f32.mrb[20].mxu0 }
 0x11f   :  { %v1846_v21 = vpop.f32.mrb[20].mxu1  ;;  %v1783_v22 = vpop.f32.mrb[21].mxu0 }
 0x120   :  { %v1784_v23 = vadd.f32 %v1783_v22, %v1782_v20  ;;  %v1847_v24 = vpop.f32.mrb[21].mxu1  ;;  %v1785_v25 = vpop.f32.mrb[22].mxu0 }
 0x121   :  { %v1848_v26 = vadd.f32 %v1847_v24, %v1846_v21  ;;  %v1849_v27 = vpop.f32.mrb[22].mxu1  ;;  %v1786_v28 = vpop.f32.mrb[23].mxu0 }
 0x122   :  { %v996_v29 = vadd.f32 %v1784_v23, %v2473_v2  ;;  %v1787_v31 = vadd.f32 %v1786_v28, %v1785_v25  ;;  %v1850_v33 = vpop.f32.mrb[23].mxu1 }
 0x123   :  { %v1851_v34 = vadd.f32 %v1850_v33, %v1849_v27 }
 0x124   :  { %v2506_v35 = vadd.f32 %v1848_v26, %v996_v29  ;;  %v999_v36 = vadd.f32 %v1787_v31, %v2473_v2 }
 0x126   :  { %v2509_v37 = vadd.f32 %v1851_v34, %v999_v36  ;;  %v1788_v38 = vpop.f32.mrb[24].mxu0 }
 0x127   :  { %v1852_v39 = vpop.f32.mrb[24].mxu1  ;;  %v1789_v40 = vpop.f32.mrb[25].mxu0 }
 0x128   :  { %v1790_v41 = vadd.f32 %v1789_v40, %v1788_v38  ;;  %v1853_v42 = vpop.f32.mrb[25].mxu1  ;;  %v1791_v43 = vpop.f32.mrb[26].mxu0 }
 0x129   :  { %v1854_v44 = vadd.f32 %v1853_v42, %v1852_v39  ;;  %v1855_v45 = vpop.f32.mrb[26].mxu1  ;;  %v1792_v47 = vpop.f32.mrb[27].mxu0 }
 0x12a   :  { %v1004_v49 = vadd.f32 %v1790_v41, %v2473_v2  ;;  %v1793_v50 = vadd.f32 %v1792_v47, %v1791_v43  ;;  %v1856_v51 = vpop.f32.mrb[27].mxu1 }
 0x12b   :  { %v1857_v52 = vadd.f32 %v1856_v51, %v1855_v45 }
 0x12c   :  { %v2512_v53 = vadd.f32 %v1854_v44, %v1004_v49  ;;  %v1007_v54 = vadd.f32 %v1793_v50, %v2473_v2 }
 0x12e   :  { %v2515_v55 = vadd.f32 %v1857_v52, %v1007_v54  ;;  %v1794_v56 = vpop.f32.mrb[28].mxu0 }
 0x12f   :  { %v1858_v57 = vpop.f32.mrb[28].mxu1  ;;  %v1795_v58 = vpop.f32.mrb[29].mxu0 }
 0x130   :  { %v1796_v59 = vadd.f32 %v1795_v58, %v1794_v56  ;;  %v1859_v60 = vpop.f32.mrb[29].mxu1  ;;  %v1797_v61 = vpop.f32.mrb[30].mxu0 }
 0x131   :  { %v1860_v63 = vadd.f32 %v1859_v60, %v1858_v57  ;;  %v1861_v1 = vpop.f32.mrb[30].mxu1  ;;  %v1798_v3 = vpop.f32.mrb[31].mxu0 }
 0x132   :  { %v1012_v4 = vadd.f32 %v1796_v59, %v2473_v2  ;;  %v1799_v5 = vadd.f32 %v1798_v3, %v1797_v61  ;;  %v1862_v6 = vpop.f32.mrb[31].mxu1 }
 0x133   :  { %v1863_v7 = vadd.f32 %v1862_v6, %v1861_v1 }
 0x134   :  { %v2518_v8 = vadd.f32 %v1860_v63, %v1012_v4  ;;  %v1015_v9 = vadd.f32 %v1799_v5, %v2473_v2 }
 0x136   :  { %v2521_v10 = vadd.f32 %v1863_v7, %v1015_v9  ;;  %v1880_v11 = vpop.f32.mrb[32].mxu0 }
 0x137   :  { %v1944_v12 = vpop.f32.mrb[32].mxu1  ;;  %v1881_v13 = vpop.f32.mrb[33].mxu0 }
 0x138   :  { %v1882_v15 = vadd.f32 %v1881_v13, %v1880_v11  ;;  %v1945_v18 = vpop.f32.mrb[33].mxu1  ;;  %v1883_v20 = vpop.f32.mrb[34].mxu0 }
 0x139   :  { %v1946_v21 = vadd.f32 %v1945_v18, %v1944_v12  ;;  %v1947_v22 = vpop.f32.mrb[34].mxu1  ;;  %v1884_v23 = vpop.f32.mrb[35].mxu0 }
 0x13a   :  { %v1150_v24 = vadd.f32 %v1882_v15, %v2476_v14  ;;  %v1885_v25 = vadd.f32 %v1884_v23, %v1883_v20  ;;  %v1948_v26 = vpop.f32.mrb[35].mxu1 }
 0x13b   :  { %v1949_v27 = vadd.f32 %v1948_v26, %v1947_v22 }
 0x13c   :  { %v1247_v28 = vadd.f32 %v1946_v21, %v1150_v24  ;;  %v1153_v29 = vadd.f32 %v1885_v25, %v2479_v16 }
 0x13e   :  { %v1250_v2 = vadd.f32 %v1949_v27, %v1153_v29  ;;  %v1886_v31 = vpop.f32.mrb[36].mxu0  ;;  %v1478_v33 = vmul.f32 %v1247_v28, %v1247_v28 }
 0x13f   :  { %v1950_v34 = vpop.f32.mrb[36].mxu1  ;;  %v1887_v36 = vpop.f32.mrb[37].mxu0 }
 0x140   :  { %v1692_v38 = vpack.c.bf16 %v1250_v2, %v1247_v28  ;;  %v1456_v39 = vadd.f32 %v1250_v2, %v1247_v28  ;;  %v1479_v40 = vmul.f32 %v1250_v2, %v1250_v2  ;;  %v1888_v41 = vadd.f32 %v1887_v36, %v1886_v31  ;;  %v1951_v42 = vpop.f32.mrb[37].mxu1  ;;  %v1889_v43 = vpop.f32.mrb[38].mxu0 }
 0x141   :  { %v1952_v44 = vadd.f32 %v1951_v42, %v1950_v34  ;;  %v1953_v45 = vpop.f32.mrb[38].mxu1  ;;  %v1890_v14 = vpop.f32.mrb[39].mxu0 }
 0x142   :  { %1693 = vst [vmem:[%s2572_s3] sm:$0xff] %v1692_v38   ;;  %v1494_v47 = vadd.f32 %v1479_v40, %v1478_v33  ;;  %v1158_v16 = vadd.f32 %v1888_v41, %v2482_v30  ;;  %v1891_v49 = vadd.f32 %v1890_v14, %v1889_v43  ;;  %v1954_v50 = vpop.f32.mrb[39].mxu1 }
 0x143   :  { %v1955_v51 = vadd.f32 %v1954_v50, %v1953_v45 }
 0x144   :  { %v1255_v52 = vadd.f32 %v1952_v44, %v1158_v16  ;;  %v1161_v54 = vadd.f32 %v1891_v49, %v2485_v32 }
 0x146   :  { %v1457_v56 = vadd.f32 %v1456_v39, %v1255_v52  ;;  %v1480_v57 = vmul.f32 %v1255_v52, %v1255_v52  ;;  %v1258_v58 = vadd.f32 %v1955_v51, %v1161_v54  ;;  %v1892_v59 = vpop.f32.mrb[40].mxu0 }
 0x147   :  { %v1956_v60 = vpop.f32.mrb[40].mxu1  ;;  %v1893_v61 = vpop.f32.mrb[41].mxu0 }
 0x148   :  { %v1495_v63 = vadd.f32 %v1494_v47, %v1480_v57  ;;  %v1697_v1 = vpack.c.bf16 %v1258_v58, %v1255_v52  ;;  %v1458_v3 = vadd.f32 %v1457_v56, %v1258_v58  ;;  %v1481_v4 = vmul.f32 %v1258_v58, %v1258_v58  ;;  %v1957_v5 = vpop.f32.mrb[41].mxu1  ;;  %v1895_v6 = vpop.f32.mrb[42].mxu0 }
 0x149   :  { %v1894_v7 = vadd.f32 %v1893_v61, %v1892_v59  ;;  %v1958_v30 = vadd.f32 %v1957_v5, %v1956_v60  ;;  %v1959_v9 = vpop.f32.mrb[42].mxu1  ;;  %v1896_v11 = vpop.f32.mrb[43].mxu0 }
 0x14a   :  { %1729 = vst [vmem:[%s2572_s3 + $0x8] sm:$0xff] %v1697_v1   ;;  %v1471_v32 = vrot.slane %v1458_v3, 4  ;;  %v1496_v12 = vadd.f32 %v1495_v63, %v1481_v4  ;;  %v1897_v13 = vadd.f32 %v1896_v11, %v1895_v6  ;;  %v1960_v15 = vpop.f32.mrb[43].mxu1 }
 0x14b   :  { %v1166_v18 = vadd.f32 %v1894_v7, %v2488_v46  ;;  %v1961_v20 = vadd.f32 %v1960_v15, %v1959_v9 }
 0x14c   :  { %v1472_v21 = vadd.f32 %v1471_v32, %v1458_v3  ;;  %v1509_v22 = vrot.slane %v1496_v12, 4  ;;  %v1169_v23 = vadd.f32 %v1897_v13, %v2491_v48 }
 0x14d   :  { %v1263_v24 = vadd.f32 %v1958_v30, %v1166_v18 }
 0x14e   :  { %v1473_v25 = vrot.slane %v1472_v21, 2  ;;  %v1510_v26 = vadd.f32 %v1509_v22, %v1496_v12  ;;  %v1266_v27 = vadd.f32 %v1961_v20, %v1169_v23  ;;  %v1898_v28 = vpop.f32.mrb[44].mxu0 }
 0x14f   :  { %v1962_v29 = vpop.f32.mrb[44].mxu1  ;;  %v1899_v2 = vpop.f32.mrb[45].mxu0 }
 0x150   :  { %v1474_v31 = vadd.f32 %v1473_v25, %v1472_v21  ;;  %v1511_v33 = vrot.slane %v1510_v26, 2  ;;  %v1702_v34 = vpack.c.bf16 %v1266_v27, %v1263_v24  ;;  %v1900_v36 = vadd.f32 %v1899_v2, %v1898_v28  ;;  %v1963_v38 = vpop.f32.mrb[45].mxu1  ;;  %v1901_v39 = vpop.f32.mrb[46].mxu0 }
 0x151   :  { %v1964_v40 = vadd.f32 %v1963_v38, %v1962_v29  ;;  %v1965_v46 = vpop.f32.mrb[46].mxu1  ;;  %v1902_v41 = vpop.f32.mrb[47].mxu0 }
 0x152   :  { %v1475_v42 = vrot.slane %v1474_v31, 1  ;;  %v1512_v43 = vadd.f32 %v1511_v33, %v1510_v26  ;;  %1730 = vst [vmem:[%s2572_s3 + $0x10] sm:$0xff] %v1702_v34   ;;  %v1174_v48 = vadd.f32 %v1900_v36, %v2494_v62  ;;  %v1903_v44 = vadd.f32 %v1902_v41, %v1901_v39  ;;  %v1966_v45 = vpop.f32.mrb[47].mxu1 }
 0x153   :  { %v1967_v14 = vadd.f32 %v1966_v45, %v1965_v46 }
 0x154   :  { %v1476_v47 = vadd.f32 %v1475_v42, %v1474_v31  ;;  %v1513_v16 = vrot.slane %v1512_v43, 1  ;;  %v1271_v49 = vadd.f32 %v1964_v40, %v1174_v48  ;;  %v1177_v50 = vadd.f32 %v1903_v44, %v2497_v0 }
 0x156   :  { %1477 = vst [vmem:[%s2573_s4] sm:$0x1] %v1476_v47  ;;  %v1514_v51 = vadd.f32 %v1513_v16, %v1512_v43  ;;  %v1274_v52 = vadd.f32 %v1967_v14, %v1177_v50  ;;  %v1904_v54 = vpop.f32.mrb[48].mxu0 }
 0x157   :  { %v1968_v56 = vpop.f32.mrb[48].mxu1  ;;  %v1905_v57 = vpop.f32.mrb[49].mxu0 }
 0x158   :  { %1515 = vst [vmem:[%s2574_s5] sm:$0x1] %v1514_v51  ;;  %v1707_v62 = vpack.c.bf16 %v1274_v52, %v1271_v49  ;;  %v1906_v58 = vadd.f32 %v1905_v57, %v1904_v54  ;;  %v1969_v59 = vpop.f32.mrb[49].mxu1  ;;  %v1907_v60 = vpop.f32.mrb[50].mxu0 }
 0x159   :  { %v1970_v61 = vadd.f32 %v1969_v59, %v1968_v56  ;;  %v1971_v63 = vpop.f32.mrb[50].mxu1  ;;  %v1908_v0 = vpop.f32.mrb[51].mxu0 }
 0x15a   :  { %1731 = vst [vmem:[%s2572_s3 + $0x18] sm:$0xff] %v1707_v62   ;;  %v1182_v1 = vadd.f32 %v1906_v58, %v2500_v17  ;;  %v1909_v3 = vadd.f32 %v1908_v0, %v1907_v60  ;;  %v1972_v4 = vpop.f32.mrb[51].mxu1 }
 0x15b   :  { %v1973_v5 = vadd.f32 %v1972_v4, %v1971_v63 }
 0x15c   :  { %v1279_v6 = vadd.f32 %v1970_v61, %v1182_v1  ;;  %v1185_v7 = vadd.f32 %v1909_v3, %v2503_v19 }
 0x15e   :  { %v1282_v30 = vadd.f32 %v1973_v5, %v1185_v7  ;;  %v1910_v9 = vpop.f32.mrb[52].mxu0 }
 0x15f   :  { %v1974_v11 = vpop.f32.mrb[52].mxu1  ;;  %v1911_v32 = vpop.f32.mrb[53].mxu0 }
 0x160   :  { %v1712_v12 = vpack.c.bf16 %v1282_v30, %v1279_v6  ;;  %v1912_v13 = vadd.f32 %v1911_v32, %v1910_v9  ;;  %v1975_v15 = vpop.f32.mrb[53].mxu1  ;;  %v1913_v18 = vpop.f32.mrb[54].mxu0 }
 0x161   :  { %v1976_v20 = vadd.f32 %v1975_v15, %v1974_v11  ;;  %v1977_v21 = vpop.f32.mrb[54].mxu1  ;;  %v1914_v22 = vpop.f32.mrb[55].mxu0 }
 0x162   :  { %1732 = vst [vmem:[%s2572_s3 + $0x20] sm:$0xff] %v1712_v12   ;;  %v1190_v17 = vadd.f32 %v1912_v13, %v2506_v35  ;;  %v1915_v23 = vadd.f32 %v1914_v22, %v1913_v18  ;;  %v1978_v24 = vpop.f32.mrb[55].mxu1 }
 0x163   :  { %v1979_v19 = vadd.f32 %v1978_v24, %v1977_v21 }
 0x164   :  { %v1287_v25 = vadd.f32 %v1976_v20, %v1190_v17  ;;  %v1193_v26 = vadd.f32 %v1915_v23, %v2509_v37 }
 0x166   :  { %v1290_v27 = vadd.f32 %v1979_v19, %v1193_v26  ;;  %v1916_v28 = vpop.f32.mrb[56].mxu0 }
 0x167   :  { %v1980_v29 = vpop.f32.mrb[56].mxu1  ;;  %v1917_v2 = vpop.f32.mrb[57].mxu0 }
 0x168   :  { %v1717_v31 = vpack.c.bf16 %v1290_v27, %v1287_v25  ;;  %v1918_v33 = vadd.f32 %v1917_v2, %v1916_v28  ;;  %v1981_v34 = vpop.f32.mrb[57].mxu1  ;;  %v1919_v36 = vpop.f32.mrb[58].mxu0 }
 0x169   :  { %v1982_v38 = vadd.f32 %v1981_v34, %v1980_v29  ;;  %v1983_v39 = vpop.f32.mrb[58].mxu1  ;;  %v1920_v40 = vpop.f32.mrb[59].mxu0 }
 0x16a   :  { %1733 = vst [vmem:[%s2572_s3 + $0x28] sm:$0xff] %v1717_v31   ;;  %v1198_v35 = vadd.f32 %v1918_v33, %v2512_v53  ;;  %v1921_v46 = vadd.f32 %v1920_v40, %v1919_v36  ;;  %v1984_v41 = vpop.f32.mrb[59].mxu1 }
 0x16b   :  { %v1985_v37 = vadd.f32 %v1984_v41, %v1983_v39 }
 0x16c   :  { %v1295_v42 = vadd.f32 %v1982_v38, %v1198_v35  ;;  %v1201_v43 = vadd.f32 %v1921_v46, %v2515_v55 }
 0x16e   :  { %v1298_v48 = vadd.f32 %v1985_v37, %v1201_v43  ;;  %v1922_v44 = vpop.f32.mrb[60].mxu0 }
 0x16f   :  { %v1986_v45 = vpop.f32.mrb[60].mxu1  ;;  %v1923_v14 = vpop.f32.mrb[61].mxu0 }
 0x170   :  { %v1722_v47 = vpack.c.bf16 %v1298_v48, %v1295_v42  ;;  %v1924_v16 = vadd.f32 %v1923_v14, %v1922_v44  ;;  %v1987_v49 = vpop.f32.mrb[61].mxu1  ;;  %v1925_v50 = vpop.f32.mrb[62].mxu0 }
 0x171   :  { %v1988_v51 = vadd.f32 %v1987_v49, %v1986_v45  ;;  %v1989_v52 = vpop.f32.mrb[62].mxu1  ;;  %v1926_v54 = vpop.f32.mrb[63].mxu0 }
 0x172   :  { %1734 = vst [vmem:[%s2572_s3 + $0x30] sm:$0xff] %v1722_v47   ;;  %v1206_v53 = vadd.f32 %v1924_v16, %v2518_v8  ;;  %v1927_v56 = vadd.f32 %v1926_v54, %v1925_v50  ;;  %v1990_v57 = vpop.f32.mrb[63].mxu1 }
 0x173   :  { %v1991_v55 = vadd.f32 %v1990_v57, %v1989_v52 }
 0x174   :  { %v1303_v62 = vadd.f32 %v1988_v51, %v1206_v53  ;;  %v1209_v58 = vadd.f32 %v1927_v56, %v2521_v10 }
 0x176   :  { %v1306_v59 = vadd.f32 %v1991_v55, %v1209_v58 }
 0x178   :  { %v1727_v60 = vpack.c.bf16 %v1306_v59, %v1303_v62 }
 0x17a   :  { %1735 = vst [vmem:[%s2572_s3 + $0x38] sm:$0xff] %v1727_v60  }

// kernel: generator_forward.6
= control target key start
LH: loop header
LB: loop body
LE: loop exit
PB: predicated region body
PF: predicated region fallthrough
CT: control target
= control target key end

     0   :  { %s2265_s18 = smov 0   ;;  %s2267_s19 = smov 0   ;;  %s2480_s0 = inlined_call_operand.vmem [shape: bf16[2,128,768], index: 0, kind: input, shape index: {}]   ;;  %s2481_s1 = inlined_call_operand.vmem [shape: bf16[2,768,128], index: 1, kind: input, shape index: {}]   ;;  %s2482_s2 = inlined_call_operand.vmem [shape: f32[1,128], index: 2, kind: input, shape index: {}]   ;;  %s2483_s3 = inlined_call_operand.vmem [shape: bf16[2,128,128], index: 3, kind: output, shape index: {0}]   ;;  %s2484_s4 = inlined_call_operand.vmem [shape: f32[2,1,1,128], index: 4, kind: output, shape index: {1}]   ;;  %s2485_s5 = inlined_call_operand.vmem [shape: f32[2,1,1,128], index: 5, kind: output, shape index: {2}]  }
   0x1   :  { %s2269_s20 = smov 0  }
   0x2 LB: > { %s28_s21 = sadd.s32 1, %s2229_s19  ;;  %p1674_p0 = scmp.ge.s32.totalorder %s2233_s20, 1  ;;  %s2233_s20 = sphi %s2269_s20, %s16_s20   ;;  %s2229_s19 = sphi %s2267_s19, %s2487_s19   ;;  %s2225_s18 = sphi %s2265_s18, %s2486_s18  }
   0x3   : > { %p30_p1 = scmp.ge.s32.totalorder %s28_s21, 2  ;;  %p228_p2 = scmp.lt.s32.totalorder %s2233_s20, 3 }
   0x5   : > { %s2489_s21 = smov (%p30_p1, %s28_s21), 0  ;;  %p229_p3 = pnand %p1674_p0, %p228_p2 }
   0x6   : > { %p283_p4 = scmp.lt.s32.totalorder (!%p229_p3), %s2225_s18, 1 }
   0x7   : > { %232 = sbr.rel (%p229_p3) target bundleno = 363 (0x16b), region = 32 }
   0xe   : > { %s2491_s18 = smov (!%p283_p4, %s2225_s18), 1 }
   0xf   : > { %s2066_s22 = smul.u32 384, %s2491_s18  ;;  %s1794_s6 = sshll.u32 %s2491_s18, 6 }
  0x10   : > { %s2428_s9 = scalar_lea.vmem %s2483_s3, %s1794_s6  ;;  %s313_s12 = scalar_lea.vmem %s2484_s4, %s2491_s18 }
  0x11   : > { %s2289_s25 = scalar_lea.vmem %s2481_s1, %s2066_s22  ;;  %s2303_s28 = scalar_lea.vmem %s2480_s0, %s2066_s22 }
  0x12   : > { %v2091_v0 = vld [vmem:[%s2289_s25 + $0x40] sm:$0xff]   ;;  %v2093_v2 = vld [vmem:[%s2289_s25 + $0x48] sm:$0xff]   ;;  %v2095_v4 = vld [vmem:[%s2289_s25 + $0x50] sm:$0xff]   ;;  %s319_s15 = scalar_lea.vmem %s2485_s5, %s2491_s18 }
  0x13   : > { %v2092_v1 = vld [vmem:[%s2289_s25] sm:$0xff]   ;;  %1858 = vmatprep.subr.bf16.mxu0 %v2091_v0  ;;  %2050 = vmatprep.subr.bf16.mxu1 %v2091_v0  ;;  %v2094_v3 = vld [vmem:[%s2289_s25 + $0x8] sm:$0xff]   ;;  %v2096_v5 = vld [vmem:[%s2289_s25 + $0x10] sm:$0xff]  }
  0x14   : > { %1859 = vmatpush3.bf16.msra.mxu0 %v2092_v1  ;;  %2058 = vmatpush3.bf16.msra.mxu1 %v2092_v1  ;;  %v2097_v6 = vld [vmem:[%s2289_s25 + $0x58] sm:$0xff]   ;;  %v2099_v8 = vld [vmem:[%s2289_s25 + $0x60] sm:$0xff]   ;;  %v2101_v10 = vld [vmem:[%s2289_s25 + $0x68] sm:$0xff]  }
  0x15   : > { %1860 = vmatprep.subr.bf16.mxu0 %v2093_v2  ;;  %2051 = vmatprep.subr.bf16.mxu1 %v2093_v2  ;;  %v2098_v7 = vld [vmem:[%s2289_s25 + $0x18] sm:$0xff]   ;;  %v2100_v9 = vld [vmem:[%s2289_s25 + $0x20] sm:$0xff]   ;;  %v2102_v13 = vld [vmem:[%s2289_s25 + $0x28] sm:$0xff]  }
  0x16   : > { %v2109_v11 = vld [vmem:[%s2303_s28 + $0x4] ss:$24 sps:$4 sm:$0xff]   ;;  %v2103_v14 = vld [vmem:[%s2289_s25 + $0x70] sm:$0xff]   ;;  %v2107_v18 = vld [vmem:[%s2303_s28] ss:$24 sps:$4 sm:$0xff]  }
  0x17   : > { %v2112_v12 = vld [vmem:[%s2303_s28 + $0xc4] ss:$24 sps:$4 sm:$0xff]   ;;  %1032 = vmatprep.mubr.bf16.mxu0 %v2109_v11  ;;  %v2104_v15 = vld [vmem:[%s2289_s25 + $0x30] sm:$0xff]   ;;  %v2110_v19 = vld [vmem:[%s2303_s28 + $0xc0] ss:$24 sps:$4 sm:$0xff]  }
  0x18   : > { %1861 = vmatpush3.bf16.msra.mxu0 %v2094_v3  ;;  %2059 = vmatpush3.bf16.msra.mxu1 %v2094_v3  ;;  %v2105_v16 = vld [vmem:[%s2289_s25 + $0x78] sm:$0xff]   ;;  %v2113_v20 = vld [vmem:[%s2289_s25 + $0xc0] sm:$0xff]   ;;  %v2117_v24 = vld [vmem:[%s2289_s25 + $0xc8] sm:$0xff]  }
  0x19   : > { %1862 = vmatprep.subr.bf16.mxu0 %v2095_v4  ;;  %2052 = vmatprep.subr.bf16.mxu1 %v2095_v4  ;;  %v2106_v17 = vld [vmem:[%s2289_s25 + $0x38] sm:$0xff]   ;;  %v2114_v21 = vld [vmem:[%s2289_s25 + $0x140] sm:$0xff]   ;;  %v2118_v25 = vld [vmem:[%s2289_s25 + $0x148] sm:$0xff]  }
  0x1a   : > { %1064 = vmatprep.mubr.bf16.mxu1 %v2112_v12  ;;  %v2115_v22 = vld [vmem:[%s2289_s25 + $0x80] sm:$0xff]   ;;  %v2121_v26 = vld [vmem:[%s2303_s28 + $0x34] ss:$24 sps:$4 sm:$0xff]   ;;  %v2125_v31 = vld [vmem:[%s2303_s28 + $0x30] ss:$24 sps:$4 sm:$0xff]  }
  0x1b   : > { %v2116_v23 = vld [vmem:[%s2289_s25 + $0x100] sm:$0xff]   ;;  %v2119_v27 = vld [vmem:[%s2289_s25 + $0x88] sm:$0xff]   ;;  %v2127_v30 = vld [vmem:[%s2289_s25 + $0xd0] sm:$0xff]  }
  0x1c   : > { %1863 = vmatpush3.bf16.msra.mxu0 %v2096_v5  ;;  %2060 = vmatpush3.bf16.msra.mxu1 %v2096_v5  ;;  %v2123_v28 = vld [vmem:[%s2303_s28 + $0xf4] ss:$24 sps:$4 sm:$0xff]   ;;  %v2126_v33 = vld [vmem:[%s2303_s28 + $0xf0] ss:$24 sps:$4 sm:$0xff]   ;;  %v2131_v36 = vld [vmem:[%s2289_s25 + $0xd8] sm:$0xff]  }
  0x1d   : > { %1864 = vmatprep.subr.bf16.mxu0 %v2097_v6  ;;  %2053 = vmatprep.subr.bf16.mxu1 %v2097_v6  ;;  %v2120_v29 = vld [vmem:[%s2289_s25 + $0x108] sm:$0xff]   ;;  %v2128_v32 = vld [vmem:[%s2289_s25 + $0x150] sm:$0xff]   ;;  %v2132_v37 = vld [vmem:[%s2289_s25 + $0x158] sm:$0xff]  }
  0x1e   : > { %v2129_v34 = vld [vmem:[%s2289_s25 + $0x90] sm:$0xff]   ;;  %v2135_v38 = vld [vmem:[%s2303_s28 + $0x64] ss:$24 sps:$4 sm:$0xff]   ;;  %v2139_v43 = vld [vmem:[%s2303_s28 + $0x60] ss:$24 sps:$4 sm:$0xff]  }
  0x1f   : > { %v2130_v35 = vld [vmem:[%s2289_s25 + $0x110] sm:$0xff]   ;;  %v2133_v39 = vld [vmem:[%s2289_s25 + $0x98] sm:$0xff]   ;;  %v2141_v42 = vld [vmem:[%s2289_s25 + $0xe0] sm:$0xff]  }
  0x20   : > { %1865 = vmatpush3.bf16.msra.mxu0 %v2098_v7  ;;  %2061 = vmatpush3.bf16.msra.mxu1 %v2098_v7  ;;  %v2137_v40 = vld [vmem:[%s2303_s28 + $0x124] ss:$24 sps:$4 sm:$0xff]   ;;  %v2140_v44 = vld [vmem:[%s2303_s28 + $0x120] ss:$24 sps:$4 sm:$0xff]   ;;  %v2145_v48 = vld [vmem:[%s2289_s25 + $0xe8] sm:$0xff]  }
  0x21   : > { %1866 = vmatprep.subr.bf16.mxu0 %v2099_v8  ;;  %2054 = vmatprep.subr.bf16.mxu1 %v2099_v8  ;;  %v2134_v41 = vld [vmem:[%s2289_s25 + $0x118] sm:$0xff]   ;;  %v2142_v45 = vld [vmem:[%s2289_s25 + $0x160] sm:$0xff]   ;;  %v2146_v49 = vld [vmem:[%s2289_s25 + $0x168] sm:$0xff]  }
  0x22   : > { %v2143_v46 = vld [vmem:[%s2289_s25 + $0xa0] sm:$0xff]   ;;  %v2149_v50 = vld [vmem:[%s2303_s28 + $0x94] ss:$24 sps:$4 sm:$0xff]   ;;  %v2153_v55 = vld [vmem:[%s2303_s28 + $0x90] ss:$24 sps:$4 sm:$0xff]  }
  0x23   : > { %v2144_v47 = vld [vmem:[%s2289_s25 + $0x120] sm:$0xff]   ;;  %v2151_v51 = vld [vmem:[%s2303_s28 + $0x154] ss:$24 sps:$4 sm:$0xff]   ;;  %v2154_v56 = vld [vmem:[%s2303_s28 + $0x150] ss:$24 sps:$4 sm:$0xff]  }
  0x24   : > { %1867 = vmatpush3.bf16.msra.mxu0 %v2100_v9  ;;  %2062 = vmatpush3.bf16.msra.mxu1 %v2100_v9  ;;  %v2147_v52 = vld [vmem:[%s2289_s25 + $0xa8] sm:$0xff]   ;;  %v2155_v54 = vld [vmem:[%s2289_s25 + $0xf0] sm:$0xff]   ;;  %v2159_v60 = vld [vmem:[%s2289_s25 + $0xf8] sm:$0xff]  }
  0x25   : > { %1868 = vmatprep.subr.bf16.mxu0 %v2101_v10  ;;  %2055 = vmatprep.subr.bf16.mxu1 %v2101_v10  ;;  %v2148_v53 = vld [vmem:[%s2289_s25 + $0x128] sm:$0xff]   ;;  %v2156_v57 = vld [vmem:[%s2289_s25 + $0x170] sm:$0xff]   ;;  %v2160_v61 = vld [vmem:[%s2289_s25 + $0x178] sm:$0xff]  }
  0x26   : > { %v2157_v58 = vld [vmem:[%s2289_s25 + $0xb0] sm:$0xff]   ;;  %v2161_v62 = vld [vmem:[%s2289_s25 + $0xb8] sm:$0xff]   ;;  %v2165_v0 = vld [vmem:[%s2303_s28 + $0xc] ss:$24 sps:$4 sm:$0xff]  }
  0x27   : > { %v2158_v59 = vld [vmem:[%s2289_s25 + $0x130] sm:$0xff]   ;;  %v2162_v63 = vld [vmem:[%s2289_s25 + $0x138] sm:$0xff]   ;;  %v2163_v1 = vld [vmem:[%s2303_s28 + $0x8] ss:$24 sps:$4 sm:$0xff]  }
  0x28   : > { %1869 = vmatpush3.bf16.msra.mxu0 %v2102_v13  ;;  %2063 = vmatpush3.bf16.msra.mxu1 %v2102_v13  ;;  %v2168_v2 = vld [vmem:[%s2303_s28 + $0x14] ss:$24 sps:$4 sm:$0xff]   ;;  %v2166_v3 = vld [vmem:[%s2303_s28 + $0x10] ss:$24 sps:$4 sm:$0xff]   ;;  %v2171_v5 = vld [vmem:[%s2303_s28 + $0x44] ss:$24 sps:$4 sm:$0xff]  }
  0x29   : > { %1870 = vmatprep.subr.bf16.mxu0 %v2103_v14  ;;  %2056 = vmatprep.subr.bf16.mxu1 %v2103_v14  ;;  %v2169_v4 = vld [vmem:[%s2303_s28 + $0x3c] ss:$24 sps:$4 sm:$0xff]   ;;  %v2173_v6 = vld [vmem:[%s2303_s28 + $0x38] ss:$24 sps:$4 sm:$0xff]   ;;  %v2175_v8 = vld [vmem:[%s2303_s28 + $0x6c] ss:$24 sps:$4 sm:$0xff]  }
  0x2a   : > { %v2174_v7 = vld [vmem:[%s2303_s28 + $0x40] ss:$24 sps:$4 sm:$0xff]   ;;  %v2177_v9 = vld [vmem:[%s2303_s28 + $0x74] ss:$24 sps:$4 sm:$0xff]   ;;  %v2180_v11 = vld [vmem:[%s2303_s28 + $0x70] ss:$24 sps:$4 sm:$0xff]  }
  0x2b   : > { %v2179_v10 = vld [vmem:[%s2303_s28 + $0x68] ss:$24 sps:$4 sm:$0xff]   ;;  %v2181_v12 = vld [vmem:[%s2303_s28 + $0x9c] ss:$24 sps:$4 sm:$0xff]   ;;  %v2185_v14 = vld [vmem:[%s2303_s28 + $0x98] ss:$24 sps:$4 sm:$0xff]  }
  0x2c   : > { %1871 = vmatpush3.bf16.msra.mxu0 %v2104_v15  ;;  %2064 = vmatpush3.bf16.msra.mxu1 %v2104_v15  ;;  %v2183_v13 = vld [vmem:[%s2303_s28 + $0xa4] ss:$24 sps:$4 sm:$0xff]   ;;  %v2186_v15 = vld [vmem:[%s2303_s28 + $0xa0] ss:$24 sps:$4 sm:$0xff]  }
  0x2d   : > { %1872 = vmatprep.subr.bf16.mxu0 %v2105_v16  ;;  %2057 = vmatprep.subr.bf16.mxu1 %v2105_v16  ;;  %v2187_v16 = vld [vmem:[%s2303_s28 + $0xcc] ss:$24 sps:$4 sm:$0xff]  }
  0x30   : > { %1873 = vmatpush3.bf16.msra.mxu0 %v2106_v17  ;;  %2065 = vmatpush3.bf16.msra.mxu1 %v2106_v17  ;;  %v2189_v17 = vld [vmem:[%s2303_s28 + $0xd4] ss:$24 sps:$4 sm:$0xff]  }
  0x31   : > { %1922 = vmatprep.subr.bf16.mxu1 %v2113_v20  ;;  %1986 = vmatprep.subr.bf16.mxu0 %v2114_v21  ;;  %v2193_v20 = vld [vmem:[%s2303_s28 + $0xfc] ss:$24 sps:$4 sm:$0xff]  }
  0x32   : > { %v2195_v21 = vld [vmem:[%s2303_s28 + $0x104] ss:$24 sps:$4 sm:$0xff]  }
  0x33   : > { %1033 = vmatmul.mubr.bf16.vlgmr.msra.gmra.mrb[0].mxu0 %v2107_v18  ;;  %1065 = vmatmul.mubr.bf16.vlgmr.msra.gmra.mrb[0].mxu1 %v2110_v19  ;;  %v2191_v18 = vld [vmem:[%s2303_s28 + $0xc8] ss:$24 sps:$4 sm:$0xff]  }
  0x34   : > { %1923 = vmatpush3.bf16.msra.mxu1 %v2115_v22  ;;  %1987 = vmatpush3.bf16.msra.mxu0 %v2116_v23  ;;  %v2192_v19 = vld [vmem:[%s2303_s28 + $0xd0] ss:$24 sps:$4 sm:$0xff]   ;;  %v2198_v23 = vld [vmem:[%s2303_s28 + $0x100] ss:$24 sps:$4 sm:$0xff]  }
  0x35   : > { %1924 = vmatprep.subr.bf16.mxu1 %v2117_v24  ;;  %1988 = vmatprep.subr.bf16.mxu0 %v2118_v25  ;;  %v2197_v22 = vld [vmem:[%s2303_s28 + $0xf8] ss:$24 sps:$4 sm:$0xff]   ;;  %v2199_v24 = vld [vmem:[%s2303_s28 + $0x12c] ss:$24 sps:$4 sm:$0xff]  }
  0x36   : > { %1040 = vmatprep.mubr.bf16.mxu0 %v2121_v26  ;;  %1072 = vmatprep.mubr.bf16.mxu1 %v2123_v28  ;;  %v2201_v25 = vld [vmem:[%s2303_s28 + $0x134] ss:$24 sps:$4 sm:$0xff]   ;;  %v2203_v26 = vld [vmem:[%s2303_s28 + $0x128] ss:$24 sps:$4 sm:$0xff]  }
  0x37   : > { %v2205_v28 = vld [vmem:[%s2303_s28 + $0x15c] ss:$24 sps:$4 sm:$0xff]  }
  0x38   : > { %1925 = vmatpush3.bf16.msra.mxu1 %v2119_v27  ;;  %1989 = vmatpush3.bf16.msra.mxu0 %v2120_v29  ;;  %v2204_v27 = vld [vmem:[%s2303_s28 + $0x130] ss:$24 sps:$4 sm:$0xff]   ;;  %v2207_v29 = vld [vmem:[%s2303_s28 + $0x164] ss:$24 sps:$4 sm:$0xff]  }
  0x39   : > { %1926 = vmatprep.subr.bf16.mxu1 %v2127_v30  ;;  %1990 = vmatprep.subr.bf16.mxu0 %v2128_v32  ;;  %v2209_v30 = vld [vmem:[%s2303_s28 + $0x158] ss:$24 sps:$4 sm:$0xff]  }
  0x3b   : > { %1041 = vmatmul.mubr.bf16.gmra.mrb[4].mxu0 %v2125_v31  ;;  %1073 = vmatmul.mubr.bf16.gmra.mrb[4].mxu1 %v2126_v33  ;;  %v2210_v31 = vld [vmem:[%s2303_s28 + $0x160] ss:$24 sps:$4 sm:$0xff]  }
  0x3c   : > { %1927 = vmatpush3.bf16.msra.mxu1 %v2129_v34  ;;  %1991 = vmatpush3.bf16.msra.mxu0 %v2130_v35 }
  0x3d   : > { %1928 = vmatprep.subr.bf16.mxu1 %v2131_v36  ;;  %1992 = vmatprep.subr.bf16.mxu0 %v2132_v37 }
  0x3e   : > { %1048 = vmatprep.mubr.bf16.mxu0 %v2135_v38  ;;  %1080 = vmatprep.mubr.bf16.mxu1 %v2137_v40 }
  0x40   : > { %1929 = vmatpush3.bf16.msra.mxu1 %v2133_v39  ;;  %1993 = vmatpush3.bf16.msra.mxu0 %v2134_v41 }
  0x41   : > { %1930 = vmatprep.subr.bf16.mxu1 %v2141_v42  ;;  %1994 = vmatprep.subr.bf16.mxu0 %v2142_v45 }
  0x43   : > { %1049 = vmatmul.mubr.bf16.gmra.mrb[8].mxu0 %v2139_v43  ;;  %1081 = vmatmul.mubr.bf16.gmra.mrb[8].mxu1 %v2140_v44 }
  0x44   : > { %1931 = vmatpush3.bf16.msra.mxu1 %v2143_v46  ;;  %1995 = vmatpush3.bf16.msra.mxu0 %v2144_v47 }
  0x45   : > { %1932 = vmatprep.subr.bf16.mxu1 %v2145_v48  ;;  %1996 = vmatprep.subr.bf16.mxu0 %v2146_v49 }
  0x46   : > { %1056 = vmatprep.mubr.bf16.mxu0 %v2149_v50  ;;  %1088 = vmatprep.mubr.bf16.mxu1 %v2151_v51 }
  0x48   : > { %1933 = vmatpush3.bf16.msra.mxu1 %v2147_v52  ;;  %1997 = vmatpush3.bf16.msra.mxu0 %v2148_v53 }
  0x49   : > { %1934 = vmatprep.subr.bf16.mxu1 %v2155_v54  ;;  %1998 = vmatprep.subr.bf16.mxu0 %v2156_v57 }
  0x4b   : > { %1057 = vmatmul.mubr.bf16.gmra.mrb[12].mxu0 %v2153_v55  ;;  %1089 = vmatmul.mubr.bf16.gmra.mrb[12].mxu1 %v2154_v56 }
  0x4c   : > { %1935 = vmatpush3.bf16.msra.mxu1 %v2157_v58  ;;  %1999 = vmatpush3.bf16.msra.mxu0 %v2158_v59 }
  0x4d   : > { %1936 = vmatprep.subr.bf16.mxu1 %v2159_v60  ;;  %2000 = vmatprep.subr.bf16.mxu0 %v2160_v61 }
  0x4e   : > { %1129 = vmatprep.mubr.bf16.mxu1 %v2165_v0  ;;  %1226 = vmatprep.mubr.bf16.mxu0 %v2168_v2 }
  0x50   : > { %1937 = vmatpush3.bf16.msra.mxu1 %v2161_v62  ;;  %2001 = vmatpush3.bf16.msra.mxu0 %v2162_v63 }
  0x53   : > { %1130 = vmatmul.mubr.bf16.vlgmr.msra.gmra.mrb[16].mxu1 %v2163_v1  ;;  %1227 = vmatmul.mubr.bf16.vlgmr.msra.gmra.mrb[16].mxu0 %v2166_v3 }
  0x54   : > { %1137 = vmatprep.mubr.bf16.mxu1 %v2169_v4  ;;  %1234 = vmatprep.mubr.bf16.mxu0 %v2171_v5 }
  0x5b   : > { %1138 = vmatmul.mubr.bf16.gmra.mrb[20].mxu1 %v2173_v6  ;;  %1235 = vmatmul.mubr.bf16.gmra.mrb[20].mxu0 %v2174_v7 }
  0x5c   : > { %1145 = vmatprep.mubr.bf16.mxu1 %v2175_v8  ;;  %1242 = vmatprep.mubr.bf16.mxu0 %v2177_v9 }
  0x63   : > { %1146 = vmatmul.mubr.bf16.gmra.mrb[24].mxu1 %v2179_v10  ;;  %1243 = vmatmul.mubr.bf16.gmra.mrb[24].mxu0 %v2180_v11 }
  0x64   : > { %1153 = vmatprep.mubr.bf16.mxu1 %v2181_v12  ;;  %1250 = vmatprep.mubr.bf16.mxu0 %v2183_v13 }
  0x6b   : > { %1154 = vmatmul.mubr.bf16.gmra.mrb[28].mxu1 %v2185_v14  ;;  %1251 = vmatmul.mubr.bf16.gmra.mrb[28].mxu0 %v2186_v15 }
  0x6c   : > { %1161 = vmatprep.mubr.bf16.mxu1 %v2187_v16  ;;  %1258 = vmatprep.mubr.bf16.mxu0 %v2189_v17  ;;  %v2419_v16 = vld [vmem:[%s2482_s2] ss:$0 sm:$0xff] }
  0x73   : > { %1162 = vmatmul.mubr.bf16.gmra.mrb[32].mxu1 %v2191_v18  ;;  %1259 = vmatmul.mubr.bf16.gmra.mrb[32].mxu0 %v2192_v19 }
  0x74   : > { %1169 = vmatprep.mubr.bf16.mxu1 %v2193_v20  ;;  %1266 = vmatprep.mubr.bf16.mxu0 %v2195_v21 }
  0x7b   : > { %1170 = vmatmul.mubr.bf16.gmra.mrb[36].mxu1 %v2197_v22  ;;  %1267 = vmatmul.mubr.bf16.gmra.mrb[36].mxu0 %v2198_v23 }
  0x7c   : > { %1177 = vmatprep.mubr.bf16.mxu1 %v2199_v24  ;;  %1274 = vmatprep.mubr.bf16.mxu0 %v2201_v25 }
  0x83   : > { %1178 = vmatmul.mubr.bf16.gmra.mrb[40].mxu1 %v2203_v26  ;;  %1275 = vmatmul.mubr.bf16.gmra.mrb[40].mxu0 %v2204_v27 }
  0x84   : > { %1185 = vmatprep.mubr.bf16.mxu1 %v2205_v28  ;;  %1282 = vmatprep.mubr.bf16.mxu0 %v2207_v29 }
  0x8b   : > { %1186 = vmatmul.mubr.bf16.gmra.mrb[44].mxu1 %v2209_v30  ;;  %1283 = vmatmul.mubr.bf16.gmra.mrb[44].mxu0 %v2210_v31 }
 0x106   : > { %v1874_v32 = vpop.f32.mrb[0].mxu0  ;;  %v1898_v33 = vpop.f32.mrb[0].mxu1 }
 0x107   : > { %v1875_v34 = vpop.f32.mrb[1].mxu0  ;;  %v1899_v35 = vpop.f32.mrb[1].mxu1 }
 0x108   : > { %v1876_v36 = vadd.f32 %v1875_v34, %v1874_v32  ;;  %v2392_v37 = vadd.f32 %v1899_v35, %v1898_v33  ;;  %v1877_v38 = vpop.f32.mrb[2].mxu0  ;;  %v1901_v39 = vpop.f32.mrb[2].mxu1 }
 0x109   : > { %v1878_v40 = vpop.f32.mrb[3].mxu0  ;;  %v1902_v41 = vpop.f32.mrb[3].mxu1 }
 0x10a   : > { %v1879_v42 = vadd.f32 %v1878_v40, %v1877_v38  ;;  %v2394_v43 = vadd.f32 %v1902_v41, %v1901_v39  ;;  %v1035_v21 = vadd.f32 %v1876_v36, %v2419_v16 }
 0x10c   : > { %v1038_v28 = vadd.f32 %v1879_v42, %v2419_v16 }
 0x10e   : > { %v1880_v44 = vpop.f32.mrb[4].mxu0  ;;  %v1904_v45 = vpop.f32.mrb[4].mxu1 }
 0x10f   : > { %v1881_v46 = vpop.f32.mrb[5].mxu0  ;;  %v1905_v47 = vpop.f32.mrb[5].mxu1 }
 0x110   : > { %v1882_v48 = vadd.f32 %v1881_v46, %v1880_v44  ;;  %v2396_v49 = vadd.f32 %v1905_v47, %v1904_v45  ;;  %v1883_v50 = vpop.f32.mrb[6].mxu0  ;;  %v1907_v51 = vpop.f32.mrb[6].mxu1 }
 0x111   : > { %v1884_v52 = vpop.f32.mrb[7].mxu0  ;;  %v1908_v53 = vpop.f32.mrb[7].mxu1 }
 0x112   : > { %v1885_v54 = vadd.f32 %v1884_v52, %v1883_v50  ;;  %v2398_v55 = vadd.f32 %v1908_v53, %v1907_v51  ;;  %v1043_v39 = vadd.f32 %v1882_v48, %v2419_v16 }
 0x114   : > { %v1046_v51 = vadd.f32 %v1885_v54, %v2419_v16 }
 0x116   : > { %v1886_v56 = vpop.f32.mrb[8].mxu0  ;;  %v1910_v57 = vpop.f32.mrb[8].mxu1 }
 0x117   : > { %v1887_v58 = vpop.f32.mrb[9].mxu0  ;;  %v1911_v59 = vpop.f32.mrb[9].mxu1 }
 0x118   : > { %v2400_v60 = vadd.f32 %v1887_v58, %v1886_v56  ;;  %v2402_v61 = vadd.f32 %v1911_v59, %v1910_v57  ;;  %v1889_v62 = vpop.f32.mrb[10].mxu0  ;;  %v1913_v63 = vpop.f32.mrb[10].mxu1 }
 0x119   : > { %v1890_v0 = vpop.f32.mrb[11].mxu0  ;;  %v1914_v1 = vpop.f32.mrb[11].mxu1 }
 0x11a   : > { %v2404_v2 = vadd.f32 %v1890_v0, %v1889_v62  ;;  %v2406_v3 = vadd.f32 %v1914_v1, %v1913_v63 }
 0x11e   : > { %v1892_v4 = vpop.f32.mrb[12].mxu0  ;;  %v1916_v5 = vpop.f32.mrb[12].mxu1 }
 0x11f   : > { %v1893_v6 = vpop.f32.mrb[13].mxu0  ;;  %v1917_v7 = vpop.f32.mrb[13].mxu1 }
 0x120   : > { %v2408_v8 = vadd.f32 %v1893_v6, %v1892_v4  ;;  %v2410_v9 = vadd.f32 %v1917_v7, %v1916_v5  ;;  %v1895_v10 = vpop.f32.mrb[14].mxu0  ;;  %v1919_v11 = vpop.f32.mrb[14].mxu1 }
 0x121   : > { %v1896_v12 = vpop.f32.mrb[15].mxu0  ;;  %v1920_v13 = vpop.f32.mrb[15].mxu1 }
 0x122   : > { %v2412_v14 = vadd.f32 %v1896_v12, %v1895_v10  ;;  %v2414_v15 = vadd.f32 %v1920_v13, %v1919_v11 }
 0x126   : > { %v1938_v17 = vpop.f32.mrb[16].mxu1  ;;  %v2002_v18 = vpop.f32.mrb[16].mxu0 }
 0x127   : > { %v1939_v19 = vpop.f32.mrb[17].mxu1  ;;  %v2003_v20 = vpop.f32.mrb[17].mxu0 }
 0x128   : > { %v1940_v22 = vadd.f32 %v1939_v19, %v1938_v17  ;;  %v2004_v23 = vadd.f32 %v2003_v20, %v2002_v18  ;;  %v1941_v24 = vpop.f32.mrb[18].mxu1  ;;  %v2005_v25 = vpop.f32.mrb[18].mxu0  ;;  %v1051_v19 = vadd.f32 %v2400_v60, %v2419_v16  ;;  %v1054_v20 = vadd.f32 %v2404_v2, %v2419_v16 }
 0x129   : > { %v1942_v26 = vpop.f32.mrb[19].mxu1  ;;  %v2006_v27 = vpop.f32.mrb[19].mxu0  ;;  %v1059_v2 = vadd.f32 %v2408_v8, %v2419_v16 }
 0x12a   : > { %v1132_v29 = vadd.f32 %v1940_v22, %v1035_v21  ;;  %v1943_v30 = vadd.f32 %v1942_v26, %v1941_v24  ;;  %v2007_v31 = vadd.f32 %v2006_v27, %v2005_v25 }
 0x12c   : > { %v1229_v32 = vadd.f32 %v2004_v23, %v1132_v29  ;;  %v1135_v33 = vadd.f32 %v1943_v30, %v1038_v28 }
 0x12e   : > { %v1232_v34 = vadd.f32 %v2007_v31, %v1135_v33  ;;  %v1944_v35 = vpop.f32.mrb[20].mxu1  ;;  %v2008_v38 = vpop.f32.mrb[20].mxu0  ;;  %v1460_v36 = vmul.f32 %v1229_v32, %v1229_v32 }
 0x12f   : > { %v1945_v40 = vpop.f32.mrb[21].mxu1  ;;  %v2009_v41 = vpop.f32.mrb[21].mxu0 }
 0x130   : > { %v1814_v42 = vpack.c.bf16 %v1232_v34, %v1229_v32  ;;  %v1438_v44 = vadd.f32 %v1232_v34, %v1229_v32  ;;  %v1461_v45 = vmul.f32 %v1232_v34, %v1232_v34  ;;  %v1946_v46 = vadd.f32 %v1945_v40, %v1944_v35  ;;  %v1947_v47 = vpop.f32.mrb[22].mxu1  ;;  %v2011_v50 = vpop.f32.mrb[22].mxu0 }
 0x131   : > { %v2010_v52 = vadd.f32 %v2009_v41, %v2008_v38  ;;  %v1948_v53 = vpop.f32.mrb[23].mxu1  ;;  %v2012_v48 = vpop.f32.mrb[23].mxu0 }
 0x132   : > { %1815 = vst [vmem:[%s2428_s9] sm:$0xff] %v1814_v42   ;;  %v1476_v56 = vadd.f32 %v1461_v45, %v1460_v36  ;;  %v1140_v57 = vadd.f32 %v1946_v46, %v1043_v39  ;;  %v1949_v58 = vadd.f32 %v1948_v53, %v1947_v47  ;;  %v2013_v59 = vadd.f32 %v2012_v48, %v2011_v50 }
 0x133   : > { %v1062_v50 = vadd.f32 %v2412_v14, %v2419_v16 }
 0x134   : > { %v1237_v62 = vadd.f32 %v2010_v52, %v1140_v57  ;;  %v1143_v63 = vadd.f32 %v1949_v58, %v1046_v51 }
 0x136   : > { %v1439_v0 = vadd.f32 %v1438_v44, %v1237_v62  ;;  %v1462_v1 = vmul.f32 %v1237_v62, %v1237_v62  ;;  %v1240_v4 = vadd.f32 %v2013_v59, %v1143_v63  ;;  %v1950_v5 = vpop.f32.mrb[24].mxu1  ;;  %v2014_v6 = vpop.f32.mrb[24].mxu0 }
 0x137   : > { %v1951_v7 = vpop.f32.mrb[25].mxu1  ;;  %v2015_v10 = vpop.f32.mrb[25].mxu0 }
 0x138   : > { %v1477_v11 = vadd.f32 %v1476_v56, %v1462_v1  ;;  %v1819_v54 = vpack.c.bf16 %v1240_v4, %v1237_v62  ;;  %v1440_v12 = vadd.f32 %v1439_v0, %v1240_v4  ;;  %v1463_v13 = vmul.f32 %v1240_v4, %v1240_v4  ;;  %v1953_v17 = vpop.f32.mrb[26].mxu1  ;;  %v2017_v18 = vpop.f32.mrb[26].mxu0 }
 0x139   : > { %v1952_v21 = vadd.f32 %v1951_v7, %v1950_v5  ;;  %v2016_v22 = vadd.f32 %v2015_v10, %v2014_v6  ;;  %v1954_v23 = vpop.f32.mrb[27].mxu1  ;;  %v2018_v24 = vpop.f32.mrb[27].mxu0  ;;  %v1067_v10 = vadd.f32 %v2392_v37, %v2419_v16 }
 0x13a   : > { %1851 = vst [vmem:[%s2428_s9 + $0x8] sm:$0xff] %v1819_v54   ;;  %v1453_v25 = vrot.slane %v1440_v12, 4  ;;  %v1478_v26 = vadd.f32 %v1477_v11, %v1463_v13  ;;  %v1955_v27 = vadd.f32 %v1954_v23, %v1953_v17  ;;  %v2019_v28 = vadd.f32 %v2018_v24, %v2017_v18 }
 0x13b   : > { %v1148_v29 = vadd.f32 %v1952_v21, %v1051_v19 }
 0x13c   : > { %v1454_v30 = vadd.f32 %v1453_v25, %v1440_v12  ;;  %v1491_v31 = vrot.slane %v1478_v26, 4  ;;  %v1151_v32 = vadd.f32 %v1955_v27, %v1054_v20  ;;  %v1070_v20 = vadd.f32 %v2394_v43, %v2419_v16 }
 0x13d   : > { %v1245_v33 = vadd.f32 %v2016_v22, %v1148_v29 }
 0x13e   : > { %v1455_v34 = vrot.slane %v1454_v30, 2  ;;  %v1492_v35 = vadd.f32 %v1491_v31, %v1478_v26  ;;  %v1248_v60 = vadd.f32 %v2019_v28, %v1151_v32  ;;  %v1956_v38 = vpop.f32.mrb[28].mxu1  ;;  %v2020_v39 = vpop.f32.mrb[28].mxu0 }
 0x13f   : > { %v1957_v36 = vpop.f32.mrb[29].mxu1  ;;  %v2021_v40 = vpop.f32.mrb[29].mxu0 }
 0x140   : > { %v1456_v41 = vadd.f32 %v1455_v34, %v1454_v30  ;;  %v1493_v42 = vrot.slane %v1492_v35, 2  ;;  %v1824_v44 = vpack.c.bf16 %v1248_v60, %v1245_v33  ;;  %v1958_v45 = vadd.f32 %v1957_v36, %v1956_v38  ;;  %v1959_v46 = vpop.f32.mrb[30].mxu1  ;;  %v2023_v47 = vpop.f32.mrb[30].mxu0 }
 0x141   : > { %v2022_v51 = vadd.f32 %v2021_v40, %v2020_v39  ;;  %v1960_v52 = vpop.f32.mrb[31].mxu1  ;;  %v2024_v53 = vpop.f32.mrb[31].mxu0  ;;  %v1075_v30 = vadd.f32 %v2396_v49, %v2419_v16  ;;  %v1078_v38 = vadd.f32 %v2398_v55, %v2419_v16 }
 0x142   : > { %v1457_v48 = vrot.slane %v1456_v41, 1  ;;  %v1494_v56 = vadd.f32 %v1493_v42, %v1492_v35  ;;  %1852 = vst [vmem:[%s2428_s9 + $0x10] sm:$0xff] %v1824_v44   ;;  %v1156_v8 = vadd.f32 %v1958_v45, %v1059_v2  ;;  %v1961_v57 = vadd.f32 %v1960_v52, %v1959_v46 }
 0x143   : > { %v2025_v58 = vadd.f32 %v2024_v53, %v2023_v47  ;;  %v1083_v47 = vadd.f32 %v2402_v61, %v2419_v16 }
 0x144   : > { %v1458_v59 = vadd.f32 %v1457_v48, %v1456_v41  ;;  %v1495_v62 = vrot.slane %v1494_v56, 1  ;;  %v1253_v63 = vadd.f32 %v2022_v51, %v1156_v8  ;;  %v1159_v0 = vadd.f32 %v1961_v57, %v1062_v50 }
 0x145   : > { %v1086_v8 = vadd.f32 %v2406_v3, %v2419_v16 }
 0x146   : > { %1459 = vst [vmem:[%s313_s12] sm:$0x1] %v1458_v59  ;;  %v1496_v14 = vadd.f32 %v1495_v62, %v1494_v56  ;;  %v1256_v1 = vadd.f32 %v2025_v58, %v1159_v0  ;;  %v1962_v4 = vpop.f32.mrb[32].mxu1  ;;  %v2026_v5 = vpop.f32.mrb[32].mxu0 }
 0x147   : > { %v1963_v6 = vpop.f32.mrb[33].mxu1  ;;  %v2027_v7 = vpop.f32.mrb[33].mxu0 }
 0x148   : > { %1497 = vst [vmem:[%s319_s15] sm:$0x1] %v1496_v14  ;;  %v1829_v11 = vpack.c.bf16 %v1256_v1, %v1253_v63  ;;  %v1964_v54 = vadd.f32 %v1963_v6, %v1962_v4  ;;  %v2028_v12 = vadd.f32 %v2027_v7, %v2026_v5  ;;  %v1965_v13 = vpop.f32.mrb[34].mxu1  ;;  %v2029_v17 = vpop.f32.mrb[34].mxu0  ;;  %v1091_v5 = vadd.f32 %v2410_v9, %v2419_v16 }
 0x149   : > { %v1966_v18 = vpop.f32.mrb[35].mxu1  ;;  %v2030_v19 = vpop.f32.mrb[35].mxu0 }
 0x14a   : > { %1853 = vst [vmem:[%s2428_s9 + $0x18] sm:$0xff] %v1829_v11   ;;  %v1164_v21 = vadd.f32 %v1964_v54, %v1067_v10  ;;  %v1967_v22 = vadd.f32 %v1966_v18, %v1965_v13  ;;  %v2031_v23 = vadd.f32 %v2030_v19, %v2029_v17  ;;  %v1094_v13 = vadd.f32 %v2414_v15, %v2419_v16 }
 0x14c   : > { %v1261_v24 = vadd.f32 %v2028_v12, %v1164_v21  ;;  %v1167_v25 = vadd.f32 %v1967_v22, %v1070_v20 }
 0x14e   : > { %v1264_v26 = vadd.f32 %v2031_v23, %v1167_v25  ;;  %v1968_v37 = vpop.f32.mrb[36].mxu1  ;;  %v2032_v27 = vpop.f32.mrb[36].mxu0 }
 0x14f   : > { %v1969_v28 = vpop.f32.mrb[37].mxu1  ;;  %v2033_v29 = vpop.f32.mrb[37].mxu0 }
 0x150   : > { %v1834_v31 = vpack.c.bf16 %v1264_v26, %v1261_v24  ;;  %v1970_v32 = vadd.f32 %v1969_v28, %v1968_v37  ;;  %v2034_v33 = vadd.f32 %v2033_v29, %v2032_v27  ;;  %v1971_v34 = vpop.f32.mrb[38].mxu1  ;;  %v2035_v43 = vpop.f32.mrb[38].mxu0 }
 0x151   : > { %v1972_v35 = vpop.f32.mrb[39].mxu1  ;;  %v2036_v60 = vpop.f32.mrb[39].mxu0 }
 0x152   : > { %1854 = vst [vmem:[%s2428_s9 + $0x20] sm:$0xff] %v1834_v31   ;;  %v1172_v39 = vadd.f32 %v1970_v32, %v1075_v30  ;;  %v1973_v2 = vadd.f32 %v1972_v35, %v1971_v34  ;;  %v2037_v36 = vadd.f32 %v2036_v60, %v2035_v43 }
 0x154   : > { %v1269_v40 = vadd.f32 %v2034_v33, %v1172_v39  ;;  %v1175_v41 = vadd.f32 %v1973_v2, %v1078_v38 }
 0x156   : > { %v1272_v42 = vadd.f32 %v2037_v36, %v1175_v41  ;;  %v1974_v44 = vpop.f32.mrb[40].mxu1  ;;  %v2038_v49 = vpop.f32.mrb[40].mxu0 }
 0x157   : > { %v1975_v45 = vpop.f32.mrb[41].mxu1  ;;  %v2039_v46 = vpop.f32.mrb[41].mxu0 }
 0x158   : > { %v1839_v50 = vpack.c.bf16 %v1272_v42, %v1269_v40  ;;  %v1976_v51 = vadd.f32 %v1975_v45, %v1974_v44  ;;  %v2040_v52 = vadd.f32 %v2039_v46, %v2038_v49  ;;  %v1977_v53 = vpop.f32.mrb[42].mxu1  ;;  %v2041_v55 = vpop.f32.mrb[42].mxu0 }
 0x159   : > { %v1978_v48 = vpop.f32.mrb[43].mxu1  ;;  %v2042_v56 = vpop.f32.mrb[43].mxu0 }
 0x15a   : > { %1855 = vst [vmem:[%s2428_s9 + $0x28] sm:$0xff] %v1839_v50   ;;  %v1180_v57 = vadd.f32 %v1976_v51, %v1083_v47  ;;  %v1979_v58 = vadd.f32 %v1978_v48, %v1977_v53  ;;  %v2043_v59 = vadd.f32 %v2042_v56, %v2041_v55 }
 0x15c   : > { %v1277_v62 = vadd.f32 %v2040_v52, %v1180_v57  ;;  %v1183_v63 = vadd.f32 %v1979_v58, %v1086_v8 }
 0x15e   : > { %v1280_v0 = vadd.f32 %v2043_v59, %v1183_v63  ;;  %v1980_v14 = vpop.f32.mrb[44].mxu1  ;;  %v2044_v61 = vpop.f32.mrb[44].mxu0 }
 0x15f   : > { %v1981_v1 = vpop.f32.mrb[45].mxu1  ;;  %v2045_v4 = vpop.f32.mrb[45].mxu0 }
 0x160   : > { %v1844_v6 = vpack.c.bf16 %v1280_v0, %v1277_v62  ;;  %v1982_v7 = vadd.f32 %v1981_v1, %v1980_v14  ;;  %v2046_v10 = vadd.f32 %v2045_v4, %v2044_v61  ;;  %v1983_v3 = vpop.f32.mrb[46].mxu1  ;;  %v2047_v11 = vpop.f32.mrb[46].mxu0 }
 0x161   : > { %v1984_v54 = vpop.f32.mrb[47].mxu1  ;;  %v2048_v12 = vpop.f32.mrb[47].mxu0 }
 0x162   : > { %1856 = vst [vmem:[%s2428_s9 + $0x30] sm:$0xff] %v1844_v6   ;;  %v1188_v17 = vadd.f32 %v1982_v7, %v1091_v5  ;;  %v1985_v18 = vadd.f32 %v1984_v54, %v1983_v3  ;;  %v2049_v19 = vadd.f32 %v2048_v12, %v2047_v11 }
 0x164   : > { %v1285_v20 = vadd.f32 %v2046_v10, %v1188_v17  ;;  %v1191_v21 = vadd.f32 %v1985_v18, %v1094_v13 }
 0x166   : > { %v1288_v22 = vadd.f32 %v2049_v19, %v1191_v21 }
 0x168   : > { %v1849_v23 = vpack.c.bf16 %v1288_v22, %v1285_v20 }
 0x16a   : > { %1857 = vst [vmem:[%s2428_s9 + $0x38] sm:$0xff] %v1849_v23  }
 0x16b PF: > { %s16_s20 = sadd.s32 1, %s2233_s20   ;;  %s2486_s18 = smov %s2229_s19 }
 0x16c   : > { %p13_p5 = scmp.ge.s32.totalorder %s16_s20, 4   ;;  %s2487_s19 = smov %s2489_s21 }
 0x16e   :  { %15 = sbr.rel (!%p13_p5) target bundleno = 2 (0x2), region = 89 }

// kernel: generator_forward.7
= control target key start
LH: loop header
LB: loop body
LE: loop exit
PB: predicated region body
PF: predicated region fallthrough
CT: control target
= control target key end

     0   :  { %s1348_s12 = smov 0   ;;  %s1350_s13 = smov 0   ;;  %s1511_s0 = inlined_call_operand.vmem [shape: bf16[2,128,384], index: 0, kind: input, shape index: {}]   ;;  %s1512_s1 = inlined_call_operand.vmem [shape: bf16[2,384,6], index: 1, kind: input, shape index: {}]   ;;  %s1513_s2 = inlined_call_operand.vmem [shape: f32[1,6], index: 2, kind: input, shape index: {}]   ;;  %s1514_s3 = inlined_call_operand.vmem [shape: bf16[2,128,6], index: 3, kind: output, shape index: {}]  }
   0x1   :  { %s1352_s14 = smov 0  }
   0x2 LB: > { %s25_s15 = sadd.s32 1, %s1322_s13  ;;  %p990_p0 = scmp.ge.s32.totalorder %s1326_s14, 1  ;;  %s1326_s14 = sphi %s1352_s14, %s13_s14   ;;  %s1322_s13 = sphi %s1350_s13, %s1516_s13   ;;  %s1318_s12 = sphi %s1348_s12, %s1515_s12  }
   0x3   : > { %p27_p1 = scmp.ge.s32.totalorder %s25_s15, 2  ;;  %p169_p2 = scmp.lt.s32.totalorder %s1326_s14, 3 }
   0x5   : > { %s1518_s15 = smov (%p27_p1, %s25_s15), 0  ;;  %p170_p3 = pnand %p990_p0, %p169_p2 }
   0x6   : > { %p208_p4 = scmp.lt.s32.totalorder (!%p170_p3), %s1318_s12, 1  ;;  %v1434_v50 = vld [vmem:[%s1513_s2] ss:$0 sm:$0xff] (!%p170_p3)  ;;  %vm867_vm0 = vcmask (!%p170_p3), 44032  }
   0x7   : > { %173 = sbr.rel (%p170_p3) target bundleno = 342 (0x156), region = 32 }
   0xe   : > { %s1520_s12 = smov (!%p208_p4, %s1318_s12), 1 }
   0xf   : > { %s1191_s16 = smul.u32 192, %s1520_s12  ;;  %s1062_s25 = sshll.u32 %s1520_s12, 6 }
  0x10   : > { %s1444_s28 = scalar_lea.vmem %s1514_s3, %s1062_s25 }
  0x11   : > { %s1374_s19 = scalar_lea.vmem %s1512_s1, %s1191_s16  ;;  %s1401_s22 = scalar_lea.vmem %s1511_s0, %s1191_s16 }
  0x12   : > { %v1216_v0 = vld [vmem:[%s1374_s19 + $0x40] sm:$0xff]   ;;  %v1218_v2 = vld [vmem:[%s1374_s19 + $0x48] sm:$0xff]   ;;  %v1221_v5 = vld [vmem:[%s1374_s19 + $0x50] sm:$0xff]  }
  0x13   : > { %v1217_v1 = vld [vmem:[%s1374_s19] sm:$0xff]   ;;  %1079 = vmatprep.subr.bf16.mxu0 %v1216_v0  ;;  %v1220_v4 = vld [vmem:[%s1374_s19 + $0x8] sm:$0xff]   ;;  %v1223_v7 = vld [vmem:[%s1374_s19 + $0x10] sm:$0xff]  }
  0x14   : > { %1080 = vmatpush3.bf16.msra.mxu0 %v1217_v1  ;;  %v1219_v3 = vld [vmem:[%s1374_s19 + $0x80] sm:$0xff]   ;;  %v1222_v6 = vld [vmem:[%s1374_s19 + $0x88] sm:$0xff]   ;;  %v1224_v8 = vld [vmem:[%s1374_s19 + $0x58] sm:$0xff]  }
  0x15   : > { %1081 = vmatprep.subr.bf16.mxu0 %v1218_v2  ;;  %1159 = vmatprep.subr.bf16.mxu1 %v1219_v3  ;;  %v1225_v9 = vld [vmem:[%s1374_s19 + $0x90] sm:$0xff]   ;;  %v1226_v10 = vld [vmem:[%s1374_s19 + $0x18] sm:$0xff]   ;;  %v1227_v11 = vld [vmem:[%s1374_s19 + $0x60] sm:$0xff]  }
  0x16   : > { %1160 = vmatpush3.bf16.msra.mxu1 %v1219_v3  ;;  %v1228_v12 = vld [vmem:[%s1374_s19 + $0x98] sm:$0xff]   ;;  %v1229_v13 = vld [vmem:[%s1374_s19 + $0x20] sm:$0xff]   ;;  %v1230_v15 = vld [vmem:[%s1374_s19 + $0x68] sm:$0xff]  }
  0x17   : > { %1161 = vmatprep.subr.bf16.mxu1 %v1222_v6  ;;  %v1231_v14 = vld [vmem:[%s1374_s19 + $0xa0] sm:$0xff]   ;;  %v1232_v16 = vld [vmem:[%s1374_s19 + $0x28] sm:$0xff]   ;;  %v1233_v18 = vld [vmem:[%s1374_s19 + $0x70] sm:$0xff]  }
  0x18   : > { %1082 = vmatpush3.bf16.msra.mxu0 %v1220_v4  ;;  %v1234_v17 = vld [vmem:[%s1374_s19 + $0xa8] sm:$0xff]   ;;  %v1235_v19 = vld [vmem:[%s1374_s19 + $0x30] sm:$0xff]   ;;  %v1236_v20 = vld [vmem:[%s1374_s19 + $0x78] sm:$0xff]  }
  0x19   : > { %1083 = vmatprep.subr.bf16.mxu0 %v1221_v5  ;;  %v1237_v21 = vld [vmem:[%s1374_s19 + $0xb0] sm:$0xff]   ;;  %v1238_v23 = vld [vmem:[%s1374_s19 + $0x38] sm:$0xff]   ;;  %v1239_v26 = vld [vmem:[%s1401_s22] ss:$12 sps:$4 sm:$0xff]  }
  0x1a   : > { %1162 = vmatpush3.bf16.msra.mxu1 %v1222_v6  ;;  %v1241_v22 = vld [vmem:[%s1401_s22 + $0x4] ss:$12 sps:$4 sm:$0xff]   ;;  %v1243_v24 = vld [vmem:[%s1401_s22 + $0x8] ss:$12 sps:$4 sm:$0xff]   ;;  %v1242_v25 = vld [vmem:[%s1374_s19 + $0xb8] sm:$0xff]  }
  0x1b   : > { %1163 = vmatprep.subr.bf16.mxu1 %v1225_v9  ;;  %625 = vmatprep.mubr.bf16.mxu0 %v1241_v22  ;;  %v1245_v27 = vld [vmem:[%s1401_s22 + $0x1c] ss:$12 sps:$4 sm:$0xff]   ;;  %v1244_v28 = vld [vmem:[%s1401_s22 + $0x20] ss:$12 sps:$4 sm:$0xff]   ;;  %v1251_v29 = vld [vmem:[%s1401_s22 + $0x38] ss:$12 sps:$4 sm:$0xff]  }
  0x1c   : > { %1084 = vmatpush3.bf16.msra.mxu0 %v1223_v7  ;;  %1175 = vmatprep.mubr.bf16.mxu1 %v1243_v24  ;;  %v1247_v30 = vld [vmem:[%s1401_s22 + $0x18] ss:$12 sps:$4 sm:$0xff]   ;;  %v1248_v31 = vld [vmem:[%s1401_s22 + $0x34] ss:$12 sps:$4 sm:$0xff]   ;;  %v1252_v32 = vld [vmem:[%s1401_s22 + $0x50] ss:$12 sps:$4 sm:$0xff]  }
  0x1d   : > { %1085 = vmatprep.subr.bf16.mxu0 %v1224_v8  ;;  %v1259_v33 = vld [vmem:[%s1401_s22 + $0x68] ss:$12 sps:$4 sm:$0xff]   ;;  %v1250_v34 = vld [vmem:[%s1401_s22 + $0x30] ss:$12 sps:$4 sm:$0xff]   ;;  %v1253_v35 = vld [vmem:[%s1401_s22 + $0x4c] ss:$12 sps:$4 sm:$0xff]  }
  0x1e   : > { %1164 = vmatpush3.bf16.msra.mxu1 %v1225_v9  ;;  %v1260_v36 = vld [vmem:[%s1401_s22 + $0x80] ss:$12 sps:$4 sm:$0xff]   ;;  %v1267_v37 = vld [vmem:[%s1401_s22 + $0x98] ss:$12 sps:$4 sm:$0xff]   ;;  %v1255_v38 = vld [vmem:[%s1401_s22 + $0x48] ss:$12 sps:$4 sm:$0xff]  }
  0x1f   : > { %1165 = vmatprep.subr.bf16.mxu1 %v1228_v12  ;;  %v1256_v39 = vld [vmem:[%s1401_s22 + $0x64] ss:$12 sps:$4 sm:$0xff]   ;;  %v1258_v41 = vld [vmem:[%s1401_s22 + $0x60] ss:$12 sps:$4 sm:$0xff]   ;;  %v1261_v42 = vld [vmem:[%s1401_s22 + $0x7c] ss:$12 sps:$4 sm:$0xff]  }
  0x20   : > { %1086 = vmatpush3.bf16.msra.mxu0 %v1226_v10  ;;  %v1268_v40 = vld [vmem:[%s1401_s22 + $0xb0] ss:$12 sps:$4 sm:$0xff]   ;;  %v1263_v43 = vld [vmem:[%s1401_s22 + $0x78] ss:$12 sps:$4 sm:$0xff]   ;;  %v1264_v44 = vld [vmem:[%s1401_s22 + $0x94] ss:$12 sps:$4 sm:$0xff]  }
  0x21   : > { %1087 = vmatprep.subr.bf16.mxu0 %v1227_v11  ;;  %v1266_v45 = vld [vmem:[%s1401_s22 + $0x90] ss:$12 sps:$4 sm:$0xff]   ;;  %v1269_v46 = vld [vmem:[%s1401_s22 + $0xac] ss:$12 sps:$4 sm:$0xff]   ;;  %v1271_v47 = vld [vmem:[%s1401_s22 + $0xa8] ss:$12 sps:$4 sm:$0xff]  }
  0x22   : > { %1166 = vmatpush3.bf16.msra.mxu1 %v1228_v12 }
  0x23   : > { %1167 = vmatprep.subr.bf16.mxu1 %v1231_v14 }
  0x24   : > { %1088 = vmatpush3.bf16.msra.mxu0 %v1229_v13 }
  0x25   : > { %1089 = vmatprep.subr.bf16.mxu0 %v1230_v15 }
  0x26   : > { %1168 = vmatpush3.bf16.msra.mxu1 %v1231_v14 }
  0x27   : > { %1169 = vmatprep.subr.bf16.mxu1 %v1234_v17 }
  0x28   : > { %1090 = vmatpush3.bf16.msra.mxu0 %v1232_v16 }
  0x29   : > { %1091 = vmatprep.subr.bf16.mxu0 %v1233_v18 }
  0x2a   : > { %1170 = vmatpush3.bf16.msra.mxu1 %v1234_v17 }
  0x2b   : > { %1171 = vmatprep.subr.bf16.mxu1 %v1237_v21 }
  0x2c   : > { %1092 = vmatpush3.bf16.msra.mxu0 %v1235_v19 }
  0x2d   : > { %1093 = vmatprep.subr.bf16.mxu0 %v1236_v20 }
  0x2e   : > { %1172 = vmatpush3.bf16.msra.mxu1 %v1237_v21 }
  0x2f   : > { %1173 = vmatprep.subr.bf16.mxu1 %v1242_v25 }
  0x30   : > { %1094 = vmatpush3.bf16.msra.mxu0 %v1238_v23 }
  0x32   : > { %1174 = vmatpush3.bf16.msra.mxu1 %v1242_v25 }
  0x33   : > { %626 = vmatmul.mubr.bf16.vlgmr.msra.gmra.mrb[0].mxu0 %v1239_v26 }
  0x34   : > { %633 = vmatprep.mubr.bf16.mxu0 %v1245_v27 }
  0x35   : > { %1176 = vmatmul.mubr.bf16.vlgmr.msra.gmra.mrb[0].mxu1 %v1244_v28 }
  0x36   : > { %1179 = vmatprep.mubr.bf16.mxu1 %v1251_v29 }
  0x3b   : > { %634 = vmatmul.mubr.bf16.gmra.mrb[4].mxu0 %v1247_v30 }
  0x3c   : > { %641 = vmatprep.mubr.bf16.mxu0 %v1248_v31 }
  0x3d   : > { %1180 = vmatmul.mubr.bf16.gmra.mrb[4].mxu1 %v1252_v32 }
  0x3e   : > { %1183 = vmatprep.mubr.bf16.mxu1 %v1259_v33 }
  0x43   : > { %642 = vmatmul.mubr.bf16.gmra.mrb[8].mxu0 %v1250_v34 }
  0x44   : > { %649 = vmatprep.mubr.bf16.mxu0 %v1253_v35 }
  0x45   : > { %1184 = vmatmul.mubr.bf16.gmra.mrb[8].mxu1 %v1260_v36 }
  0x46   : > { %1187 = vmatprep.mubr.bf16.mxu1 %v1267_v37 }
  0x4b   : > { %650 = vmatmul.mubr.bf16.gmra.mrb[12].mxu0 %v1255_v38 }
  0x4c   : > { %657 = vmatprep.mubr.bf16.mxu0 %v1256_v39 }
  0x4d   : > { %1188 = vmatmul.mubr.bf16.gmra.mrb[12].mxu1 %v1268_v40 }
  0x53   : > { %658 = vmatmul.mubr.bf16.gmra.mrb[16].mxu0 %v1258_v41 }
  0x54   : > { %665 = vmatprep.mubr.bf16.mxu0 %v1261_v42 }
  0x5b   : > { %666 = vmatmul.mubr.bf16.gmra.mrb[20].mxu0 %v1263_v43 }
  0x5c   : > { %673 = vmatprep.mubr.bf16.mxu0 %v1264_v44 }
  0x63   : > { %674 = vmatmul.mubr.bf16.gmra.mrb[24].mxu0 %v1266_v45 }
  0x64   : > { %681 = vmatprep.mubr.bf16.mxu0 %v1269_v46 }
  0x6b   : > { %682 = vmatmul.mubr.bf16.gmra.mrb[28].mxu0 %v1271_v47 }
 0x106   : > { %v1095_v48 = vpop.f32.mrb[0].mxu0 }
 0x107   : > { %v1096_v49 = vpop.f32.mrb[1].mxu0 }
 0x108   : > { %v1097_v51 = vadd.f32 %v1096_v49, %v1095_v48  ;;  %v1098_v52 = vpop.f32.mrb[2].mxu0  ;;  %v1177_v54 = vpop.f32.mrb[0].mxu1 }
 0x109   : > { %v1099_v53 = vpop.f32.mrb[3].mxu0  ;;  %v724_v57 = vpop.f32.mrb[1].mxu1 }
 0x10a   : > { %v1100_v55 = vadd.f32 %v1099_v53, %v1098_v52  ;;  %v628_v56 = vadd.f32 %v1097_v51, %v1434_v50  ;;  %v1178_v58 = vpop.f32.mrb[2].mxu1 }
 0x10b   : > { %v727_v61 = vpop.f32.mrb[3].mxu1 }
 0x10c   : > { %v725_v59 = vadd.f32 %v724_v57, %v628_v56  ;;  %v631_v60 = vadd.f32 %v1100_v55, %v1434_v50 }
 0x10e   : > { %1272 = vtanh.f32 %v725_v59  ;;  %v728_v62 = vadd.f32 %v727_v61, %v631_v60  ;;  %v1101_v63 = vpop.f32.mrb[4].mxu0 }
 0x10f   : > { %v1102_v0 = vpop.f32.mrb[5].mxu0 }
 0x110   : > { %1274 = vtanh.f32 %v728_v62  ;;  %v1103_v1 = vadd.f32 %v1102_v0, %v1101_v63  ;;  %v1104_v2 = vpop.f32.mrb[6].mxu0  ;;  %v1181_v4 = vpop.f32.mrb[4].mxu1 }
 0x111   : > { %v1105_v3 = vpop.f32.mrb[7].mxu0  ;;  %v740_v7 = vpop.f32.mrb[5].mxu1 }
 0x112   : > { %v636_v5 = vadd.f32 %v1103_v1, %v1434_v50  ;;  %v1106_v6 = vadd.f32 %v1105_v3, %v1104_v2  ;;  %v1182_v8 = vpop.f32.mrb[6].mxu1 }
 0x113   : > { %v743_v11 = vpop.f32.mrb[7].mxu1 }
 0x114   : > { %v733_v9 = vadd.f32 %v1177_v54, %v636_v5  ;;  %v639_v10 = vadd.f32 %v1106_v6, %v1434_v50 }
 0x116   : > { %1276 = vtanh.f32 %v733_v9  ;;  %v736_v12 = vadd.f32 %v1178_v58, %v639_v10  ;;  %v1107_v13 = vpop.f32.mrb[8].mxu0 }
 0x117   : > { %v1108_v14 = vpop.f32.mrb[9].mxu0 }
 0x118   : > { %v1273_v15 = vpop.eup %1272  ;;  %1278 = vtanh.f32 %v736_v12  ;;  %v1109_v16 = vadd.f32 %v1108_v14, %v1107_v13  ;;  %v1110_v17 = vpop.f32.mrb[10].mxu0 }
 0x119   : > { %v1063_v18 = vpack.c.bf16 %v1273_v15, %v1273_v15  ;;  %v1111_v19 = vpop.f32.mrb[11].mxu0  ;;  %v1446_v20 = vpop.f32.mrb[8].mxu1 }
 0x11a   : > { %v1275_v21 = vpop.eup %1274  ;;  %v1112_v22 = vadd.f32 %v1111_v19, %v1110_v17  ;;  %v644_v23 = vadd.f32 %v1109_v16, %v1434_v50  ;;  %v756_v24 = vpop.f32.mrb[9].mxu1 }
 0x11b   : > { %868 = vst.msk [vmem:[%s1444_s28] sm:$0xf] %vm867_vm0, %v1063_v18  ;;  %v1064_v25 = vpack.c.bf16 %v1275_v21, %v1275_v21  ;;  %v1451_v26 = vpop.f32.mrb[10].mxu1 }
 0x11c   : > { %v741_v27 = vadd.f32 %v740_v7, %v644_v23  ;;  %v647_v28 = vadd.f32 %v1112_v22, %v1434_v50  ;;  %v759_v29 = vpop.f32.mrb[11].mxu1 }
 0x11d   : > { %869 = vst.msk [vmem:[%s1444_s28 + $0x4] sm:$0xf] %vm867_vm0, %v1064_v25 }
 0x11e   : > { %1280 = vtanh.f32 %v741_v27  ;;  %v744_v30 = vadd.f32 %v743_v11, %v647_v28  ;;  %v1113_v31 = vpop.f32.mrb[12].mxu0 }
 0x11f   : > { %v1114_v32 = vpop.f32.mrb[13].mxu0 }
 0x120   : > { %v1277_v33 = vpop.eup %1276  ;;  %1282 = vtanh.f32 %v744_v30  ;;  %v1115_v34 = vadd.f32 %v1114_v32, %v1113_v31  ;;  %v1116_v35 = vpop.f32.mrb[14].mxu0 }
 0x121   : > { %v1065_v36 = vpack.c.bf16 %v1277_v33, %v1277_v33  ;;  %v1117_v37 = vpop.f32.mrb[15].mxu0  ;;  %v1456_v38 = vpop.f32.mrb[12].mxu1 }
 0x122   : > { %v1279_v39 = vpop.eup %1278  ;;  %v652_v40 = vadd.f32 %v1115_v34, %v1434_v50  ;;  %v1118_v41 = vadd.f32 %v1117_v37, %v1116_v35  ;;  %v772_v42 = vpop.f32.mrb[13].mxu1 }
 0x123   : > { %870 = vst.msk [vmem:[%s1444_s28 + $0x8] sm:$0xf] %vm867_vm0, %v1065_v36  ;;  %v1066_v43 = vpack.c.bf16 %v1279_v39, %v1279_v39  ;;  %v1461_v44 = vpop.f32.mrb[14].mxu1 }
 0x124   : > { %v749_v45 = vadd.f32 %v1181_v4, %v652_v40  ;;  %v655_v46 = vadd.f32 %v1118_v41, %v1434_v50  ;;  %v775_v47 = vpop.f32.mrb[15].mxu1 }
 0x125   : > { %871 = vst.msk [vmem:[%s1444_s28 + $0xc] sm:$0xf] %vm867_vm0, %v1066_v43 }
 0x126   : > { %1284 = vtanh.f32 %v749_v45  ;;  %v752_v48 = vadd.f32 %v1182_v8, %v655_v46  ;;  %v1119_v49 = vpop.f32.mrb[16].mxu0 }
 0x127   : > { %v1120_v51 = vpop.f32.mrb[17].mxu0 }
 0x128   : > { %v1281_v52 = vpop.eup %1280  ;;  %1286 = vtanh.f32 %v752_v48  ;;  %v1121_v53 = vadd.f32 %v1120_v51, %v1119_v49  ;;  %v1122_v54 = vpop.f32.mrb[18].mxu0 }
 0x129   : > { %v1067_v55 = vpack.c.bf16 %v1281_v52, %v1281_v52  ;;  %v1123_v56 = vpop.f32.mrb[19].mxu0 }
 0x12a   : > { %v1283_v57 = vpop.eup %1282  ;;  %v1124_v58 = vadd.f32 %v1123_v56, %v1122_v54  ;;  %v660_v59 = vadd.f32 %v1121_v53, %v1434_v50 }
 0x12b   : > { %872 = vst.msk [vmem:[%s1444_s28 + $0x10] sm:$0xf] %vm867_vm0, %v1067_v55  ;;  %v1068_v60 = vpack.c.bf16 %v1283_v57, %v1283_v57 }
 0x12c   : > { %v757_v61 = vadd.f32 %v756_v24, %v660_v59  ;;  %v663_v62 = vadd.f32 %v1124_v58, %v1434_v50 }
 0x12d   : > { %873 = vst.msk [vmem:[%s1444_s28 + $0x14] sm:$0xf] %vm867_vm0, %v1068_v60 }
 0x12e   : > { %1288 = vtanh.f32 %v757_v61  ;;  %v760_v63 = vadd.f32 %v759_v29, %v663_v62  ;;  %v1125_v0 = vpop.f32.mrb[20].mxu0 }
 0x12f   : > { %v1126_v1 = vpop.f32.mrb[21].mxu0 }
 0x130   : > { %v1285_v2 = vpop.eup %1284  ;;  %1290 = vtanh.f32 %v760_v63  ;;  %v1127_v3 = vadd.f32 %v1126_v1, %v1125_v0  ;;  %v1128_v4 = vpop.f32.mrb[22].mxu0 }
 0x131   : > { %v1069_v5 = vpack.c.bf16 %v1285_v2, %v1285_v2  ;;  %v1129_v6 = vpop.f32.mrb[23].mxu0 }
 0x132   : > { %v1287_v7 = vpop.eup %1286  ;;  %v668_v8 = vadd.f32 %v1127_v3, %v1434_v50  ;;  %v1130_v9 = vadd.f32 %v1129_v6, %v1128_v4 }
 0x133   : > { %874 = vst.msk [vmem:[%s1444_s28 + $0x18] sm:$0xf] %vm867_vm0, %v1069_v5  ;;  %v1070_v10 = vpack.c.bf16 %v1287_v7, %v1287_v7 }
 0x134   : > { %v765_v11 = vadd.f32 %v1446_v20, %v668_v8  ;;  %v671_v12 = vadd.f32 %v1130_v9, %v1434_v50 }
 0x135   : > { %875 = vst.msk [vmem:[%s1444_s28 + $0x1c] sm:$0xf] %vm867_vm0, %v1070_v10 }
 0x136   : > { %1292 = vtanh.f32 %v765_v11  ;;  %v768_v13 = vadd.f32 %v1451_v26, %v671_v12  ;;  %v1131_v14 = vpop.f32.mrb[24].mxu0 }
 0x137   : > { %v1132_v15 = vpop.f32.mrb[25].mxu0 }
 0x138   : > { %v1289_v16 = vpop.eup %1288  ;;  %1294 = vtanh.f32 %v768_v13  ;;  %v1133_v17 = vadd.f32 %v1132_v15, %v1131_v14  ;;  %v1134_v18 = vpop.f32.mrb[26].mxu0 }
 0x139   : > { %v1071_v19 = vpack.c.bf16 %v1289_v16, %v1289_v16  ;;  %v1135_v21 = vpop.f32.mrb[27].mxu0 }
 0x13a   : > { %v1291_v22 = vpop.eup %1290  ;;  %v1136_v23 = vadd.f32 %v1135_v21, %v1134_v18  ;;  %v676_v20 = vadd.f32 %v1133_v17, %v1434_v50 }
 0x13b   : > { %876 = vst.msk [vmem:[%s1444_s28 + $0x20] sm:$0xf] %vm867_vm0, %v1071_v19  ;;  %v1072_v24 = vpack.c.bf16 %v1291_v22, %v1291_v22 }
 0x13c   : > { %v773_v25 = vadd.f32 %v772_v42, %v676_v20  ;;  %v679_v26 = vadd.f32 %v1136_v23, %v1434_v50 }
 0x13d   : > { %877 = vst.msk [vmem:[%s1444_s28 + $0x24] sm:$0xf] %vm867_vm0, %v1072_v24 }
 0x13e   : > { %1296 = vtanh.f32 %v773_v25  ;;  %v776_v27 = vadd.f32 %v775_v47, %v679_v26  ;;  %v1137_v28 = vpop.f32.mrb[28].mxu0 }
 0x13f   : > { %v1138_v29 = vpop.f32.mrb[29].mxu0 }
 0x140   : > { %v1293_v30 = vpop.eup %1292  ;;  %1298 = vtanh.f32 %v776_v27  ;;  %v1139_v31 = vadd.f32 %v1138_v29, %v1137_v28  ;;  %v1140_v32 = vpop.f32.mrb[30].mxu0 }
 0x141   : > { %v1073_v33 = vpack.c.bf16 %v1293_v30, %v1293_v30  ;;  %v1141_v34 = vpop.f32.mrb[31].mxu0 }
 0x142   : > { %v1295_v35 = vpop.eup %1294  ;;  %v684_v36 = vadd.f32 %v1139_v31, %v1434_v50  ;;  %v1142_v37 = vadd.f32 %v1141_v34, %v1140_v32 }
 0x143   : > { %878 = vst.msk [vmem:[%s1444_s28 + $0x28] sm:$0xf] %vm867_vm0, %v1073_v33  ;;  %v1074_v39 = vpack.c.bf16 %v1295_v35, %v1295_v35 }
 0x144   : > { %v781_v40 = vadd.f32 %v1456_v38, %v684_v36  ;;  %v687_v41 = vadd.f32 %v1142_v37, %v1434_v50 }
 0x145   : > { %879 = vst.msk [vmem:[%s1444_s28 + $0x2c] sm:$0xf] %vm867_vm0, %v1074_v39 }
 0x146   : > { %1300 = vtanh.f32 %v781_v40  ;;  %v784_v42 = vadd.f32 %v1461_v44, %v687_v41 }
 0x148   : > { %v1297_v43 = vpop.eup %1296  ;;  %1302 = vtanh.f32 %v784_v42 }
 0x149   : > { %v1075_v45 = vpack.c.bf16 %v1297_v43, %v1297_v43 }
 0x14a   : > { %v1299_v46 = vpop.eup %1298 }
 0x14b   : > { %880 = vst.msk [vmem:[%s1444_s28 + $0x30] sm:$0xf] %vm867_vm0, %v1075_v45  ;;  %v1076_v47 = vpack.c.bf16 %v1299_v46, %v1299_v46 }
 0x14d   : > { %881 = vst.msk [vmem:[%s1444_s28 + $0x34] sm:$0xf] %vm867_vm0, %v1076_v47 }
 0x150   : > { %v1301_v48 = vpop.eup %1300 }
 0x151   : > { %v1077_v49 = vpack.c.bf16 %v1301_v48, %v1301_v48 }
 0x152   : > { %v1303_v38 = vpop.eup %1302 }
 0x153   : > { %882 = vst.msk [vmem:[%s1444_s28 + $0x38] sm:$0xf] %vm867_vm0, %v1077_v49  ;;  %v1078_v50 = vpack.c.bf16 %v1303_v38, %v1303_v38 }
 0x155   : > { %883 = vst.msk [vmem:[%s1444_s28 + $0x3c] sm:$0xf] %vm867_vm0, %v1078_v50 }
 0x156 PF: > { %s13_s14 = sadd.s32 1, %s1326_s14   ;;  %s1515_s12 = smov %s1322_s13 }
 0x157   : > { %p10_p5 = scmp.ge.s32.totalorder %s13_s14, 4   ;;  %s1516_s13 = smov %s1518_s15 }
 0x159   :  { %12 = sbr.rel (!%p10_p5) target bundleno = 2 (0x2), region = 65 }

</bundles_post_ra>
